<compile_context>
chip_gen: v5e
topology: v5e:2x2
jax: 0.10.0
libtpu: 0.0.40
codegen_flags: <defaults>
</compile_context>

<pallas_src>
import numpy as np
import jax
import jax.numpy as jnp
from jax import lax
from jax.experimental import pallas as pl
from jax.experimental.pallas import tpu as pltpu

LATENT_D = 32
NUM_NEURONS = 512
NUM_JOINTS = 21
OUT_COLS = 6 * NUM_JOINTS       # 126 real output columns
OUT_PAD = 128                   # padded to one full 128-lane tile
LEAKY_SLOPE = 0.01              # nn.LeakyReLU default
NORM_EPS = 1e-12                # F.normalize default eps


def _group_sum_bcast(t):
    """Per-joint sum over the three 21-lane x/y/z groups, broadcast back to
    lanes [0, 63).  `t` must be zero outside lanes [0, 63)."""
    J = NUM_JOINTS
    return (t
            + pltpu.roll(t, shift=J, axis=1)
            + pltpu.roll(t, shift=2 * J, axis=1)
            + pltpu.roll(t, shift=OUT_PAD - J, axis=1)
            + pltpu.roll(t, shift=OUT_PAD - 2 * J, axis=1))


def vposer_kernel(zin_ref, w1_ref, b1_ref, w2_ref, b2_ref, w3_ref, b3_ref,
                  out_ref):
    J = NUM_JOINTS
    mu = zin_ref[0]
    logvar = zin_ref[1]
    eps = zin_ref[2]

    # std = softplus(logvar)  (PyTorch softplus: linear above threshold 20)
    std = jnp.where(logvar > 20.0, logvar,
                    jnp.log1p(jnp.exp(jnp.minimum(logvar, 20.0))))
    # rsample: z = mu + std * eps,  eps ~ N(0, 1) supplied as an input
    z = mu + std * eps

    b1v = b1_ref[...]
    b2v = b2_ref[...]
    hdt = b1v.dtype                       # bf16 on v6e/v7x, f32 on v5e-

    # Linear(32 -> 512) + LeakyReLU   (bf16 MXU matmul, f32 accumulation)
    h1 = jnp.dot(z.astype(jnp.bfloat16), w1_ref[...],
                 preferred_element_type=jnp.float32)
    h1 = h1.astype(hdt) + b1v
    h1 = jnp.maximum(h1, LEAKY_SLOPE * h1)

    # TODO(synk): nn.Dropout(0.1) is stochastic in PyTorch train mode; treated
    # as identity (inference semantics) here.

    # Linear(512 -> 512) + LeakyReLU
    h2 = jnp.dot(h1.astype(jnp.bfloat16), w2_ref[...],
                 preferred_element_type=jnp.float32)
    h2 = h2.astype(hdt) + b2v
    h2 = jnp.maximum(h2, LEAKY_SLOPE * h2)

    # Linear(512 -> 128 padded); columns grouped per rotation component:
    # lanes [a1x(21)|a1y(21)|a1z(21)|a2x(21)|a2y(21)|a2z(21)|pad(2)]
    y = jnp.dot(h2.astype(jnp.bfloat16), w3_ref[...],
                preferred_element_type=jnp.float32) + b3_ref[...]

    # --- ContinousRotReprDecoder (Gram-Schmidt), lane-packed f32 epilogue ---
    lane = lax.broadcasted_iota(jnp.int32, y.shape, 1)
    m_xyz = lane < 3 * J                                 # lanes [0, 63)

    a1 = jnp.where(m_xyz, y, 0.0)                        # a1x|a1y|a1z
    a2 = jnp.where(m_xyz, pltpu.roll(y, shift=OUT_PAD - 3 * J, axis=1), 0.0)

    # F.normalize: x / max(||x||, eps) == x * rsqrt(max(||x||^2, eps^2))  (EUP)
    eps2 = NORM_EPS * NORM_EPS
    b1 = a1 * lax.rsqrt(jnp.maximum(_group_sum_bcast(a1 * a1), eps2))
    dot = _group_sum_bcast(b1 * a2)                      # per-joint <b1, a2>
    u = a2 - dot * b1
    b2 = u * lax.rsqrt(jnp.maximum(_group_sum_bcast(u * u), eps2))

    # b3 = cross(b1, b2): only the x/y rows of the rotation matrix are needed.
    b1r1 = pltpu.roll(b1, shift=J, axis=1)
    b2r1 = pltpu.roll(b2, shift=J, axis=1)
    b3x = b1r1 * b2 - b1 * b2r1          # b1y*b2z - b1z*b2y, valid lanes [42,63)

    b1r3 = pltpu.roll(b1, shift=3 * J, axis=1)
    b2r3 = pltpu.roll(b2, shift=3 * J, axis=1)           # b2x|b2y at lanes [63,105)
    b1r5 = pltpu.roll(b1, shift=5 * J, axis=1)
    b2r5 = pltpu.roll(b2, shift=5 * J, axis=1)
    b3y = b1r3 * b2r5 - b1r5 * b2r3      # b1z*b2x - b1x*b2z, valid lanes [105,126)

    # single lane-dense store: [b1x|b1y|b3x|b2x|b2y|b3y|pad], 21 joints each
    out_ref[...] = jnp.where(lane < 2 * J, b1,
                   jnp.where(lane < 3 * J, b3x,
                   jnp.where(lane < 5 * J, b2r3, b3y)))


def make_params(key):
    """Deterministic synthetic parameters (shapes from VPoserDecoder.__init__)."""
    k1, k2, k3, k4, k5, k6 = jax.random.split(key, 6)

    def lin(kw, kb, fan_in, fan_out):
        w = jax.random.normal(kw, (fan_in, fan_out), jnp.float32) / np.sqrt(fan_in)
        b = jax.random.normal(kb, (1, fan_out), jnp.float32) * 0.01
        return w, b

    w1, b1 = lin(k1, k2, LATENT_D, NUM_NEURONS)
    w2, b2 = lin(k3, k4, NUM_NEURONS, NUM_NEURONS)
    w3, b3 = lin(k5, k6, NUM_NEURONS, NUM_JOINTS * 6)
    return w1, b1, w2, b2, w3, b3


def _column_perm():
    """Last-linear column c = j*6 + i*2 + k  ->  kernel lane  k*63 + i*21 + j."""
    perm = np.zeros(OUT_COLS, dtype=np.int32)
    for j in range(NUM_JOINTS):
        for i in range(3):          # x / y / z
            for k in range(2):      # a1 / a2
                perm[k * 3 * NUM_JOINTS + i * NUM_JOINTS + j] = j * 6 + i * 2 + k
    return perm


def _output_perm():
    """Kernel output lane k*21 + j  ->  PyTorch column j*6 + m.

    Kernel lane groups k: [b1x, b1y, b3x, b2x, b2y, b3y];
    matrix_to_rotation_6d order m: [b1x, b2x, b3x, b1y, b2y, b3y].
    """
    g = np.array([0, 3, 2, 1, 4, 5], dtype=np.int32)     # m -> kernel group k
    perm = np.zeros(OUT_COLS, dtype=np.int32)
    for j in range(NUM_JOINTS):
        for m in range(6):
            perm[j * 6 + m] = g[m] * NUM_JOINTS + j
    return perm


_OUT_PERM = _output_perm()


def _hidden_dtype():
    """bf16 hidden-layer elementwise on chips with a bf16 VPU (v6e/v7x);
    f32 on v5e and older (no bf16 VALU there)."""
    try:
        kind = jax.devices()[0].device_kind.lower()
    except Exception:
        return jnp.bfloat16
    if any(t in kind for t in ("v2", "v3", "v4", "v5")):
        return jnp.float32
    return jnp.bfloat16


def prepare_params(params, hidden_dtype=jnp.bfloat16):
    """One-time param prep: permute + pad last layer, cast to kernel dtypes."""
    w1, b1, w2, b2, w3, b3 = params
    perm = _column_perm()
    padc = OUT_PAD - OUT_COLS
    w3p = jnp.pad(w3[:, perm], ((0, 0), (0, padc)))
    b3p = jnp.pad(b3[:, perm], ((0, 0), (0, padc)))
    return (w1.astype(jnp.bfloat16), b1.astype(hidden_dtype),
            w2.astype(jnp.bfloat16), b2.astype(hidden_dtype),
            w3p.astype(jnp.bfloat16), b3p.astype(jnp.float32))


def _round8(n):
    return ((n + 7) // 8) * 8


def _choose_tile_b(batch):
    # Small batches: one padded multiple-of-8 tile.
    if batch <= 256:
        return max(8, _round8(batch))
    # Large batches: big tiles amortize per-grid-step overhead (VMEM is not
    # the constraint), but keep >= 2 grid steps so the "parallel" axis can be
    # sharded across v7x's two TensorCores.
    cand = 1024 if batch >= 2048 else 512
    return min(cand, _round8((batch + 1) // 2))


def vposer_decoder(mu, logvar, eps, prepared):
    w1, b1, w2, b2, w3p, b3p = prepared
    B = mu.shape[0]
    tile_b = _choose_tile_b(B)
    B_pad = ((B + tile_b - 1) // tile_b) * tile_b

    # one stacked input => one DMA descriptor per grid step instead of three
    zin = jnp.stack([mu, logvar, eps])                     # (3, B, 32)
    if B_pad != B:
        zin = jnp.pad(zin, ((0, 0), (0, B_pad - B), (0, 0)))

    grid = (B_pad // tile_b,)
    const = lambda i: (0, 0)      # weights: DMA'd once, VMEM-resident

    out_pad = pl.pallas_call(
        vposer_kernel,
        out_shape=jax.ShapeDtypeStruct((B_pad, OUT_PAD), jnp.float32),
        grid=grid,
        in_specs=[pl.BlockSpec((3, tile_b, LATENT_D), lambda i: (0, i, 0)),
                  pl.BlockSpec((LATENT_D, NUM_NEURONS), const),
                  pl.BlockSpec((1, NUM_NEURONS), const),
                  pl.BlockSpec((NUM_NEURONS, NUM_NEURONS), const),
                  pl.BlockSpec((1, NUM_NEURONS), const),
                  pl.BlockSpec((NUM_NEURONS, OUT_PAD), const),
                  pl.BlockSpec((1, OUT_PAD), const)],
        out_specs=pl.BlockSpec((tile_b, OUT_PAD), lambda i: (i, 0)),
        compiler_params=pltpu.CompilerParams(
            dimension_semantics=("parallel",)),
    )(zin, w1, b1, w2, b2, w3p, b3p)

    # glue: drop batch/lane padding, restore PyTorch per-joint interleaving
    out6 = out_pad[:B, :OUT_COLS]
    return out6[:, _OUT_PERM]


def vposer_reference(mu, logvar, eps, params):
    """Plain-JAX f32 reference mirroring the PyTorch forward pass."""
    w1, b1, w2, b2, w3, b3 = params
    std = jnp.where(logvar > 20.0, logvar,
                    jnp.log1p(jnp.exp(jnp.minimum(logvar, 20.0))))
    z = mu + std * eps
    h1 = z @ w1 + b1
    h1 = jnp.where(h1 >= 0, h1, LEAKY_SLOPE * h1)
    h2 = h1 @ w2 + b2
    h2 = jnp.where(h2 >= 0, h2, LEAKY_SLOPE * h2)
    y = h2 @ w3 + b3                                   # (B, 126)
    B = mu.shape[0]
    r = y.reshape(B * NUM_JOINTS, 3, 2)
    a1, a2 = r[:, :, 0], r[:, :, 1]
    b1v = a1 / jnp.maximum(jnp.linalg.norm(a1, axis=1, keepdims=True), NORM_EPS)
    d = jnp.sum(b1v * a2, axis=1, keepdims=True)
    u = a2 - d * b1v
    b2v = u / jnp.maximum(jnp.linalg.norm(u, axis=1, keepdims=True), NORM_EPS)
    b3v = jnp.cross(b1v, b2v)
    rot = jnp.stack([b1v, b2v, b3v], axis=-1)          # (B*21, 3, 3)
    return rot[:, :2, :].reshape(B, -1)                # first two rows per joint


if __name__ == "__main__":
    key = jax.random.PRNGKey(0)
    kp, kmu, klv, keps = jax.random.split(key, 4)

    params = make_params(kp)
    prepared = prepare_params(params, _hidden_dtype())   # one-time prep

    B = 2
    mu = jax.random.normal(kmu, (B, LATENT_D), jnp.float32)
    logvar = jax.random.normal(klv, (B, LATENT_D), jnp.float32)
    eps = jax.random.normal(keps, (B, LATENT_D), jnp.float32)  # reparam noise

    fwd = jax.jit(vposer_decoder)
    out = fwd(mu, logvar, eps, prepared)
    jax.block_until_ready(out)

    assert out.shape == (B, NUM_JOINTS * 6)
    assert bool(jnp.all(jnp.isfinite(out)))

    # check vs f32 reference: loose max-abs (bf16 matmuls + possible
    # Gram-Schmidt conditioning) plus a robust median-abs regression check.
    ref = vposer_reference(mu, logvar, eps, params)
    diff = jnp.abs(out - ref)
    max_diff = float(jnp.max(diff))
    med_diff = float(jnp.median(diff))
    assert max_diff < 0.5, f"max diff vs f32 reference too large: {max_diff}"
    assert med_diff < 0.05, f"median diff vs f32 reference too large: {med_diff}"

    print("KERNEL_OK")
</pallas_src>

<mosaic_0001>
module attributes {stable_mosaic.version = 11 : i64} {
  func.func @vposer_kernel(%arg0: i32, %arg1: memref<3x8x32xf32, #tpu.memory_space<vmem>>, %arg2: memref<32x512xbf16, #tpu.memory_space<vmem>>, %arg3: memref<1x512xbf16, #tpu.memory_space<vmem>>, %arg4: memref<512x512xbf16, #tpu.memory_space<vmem>>, %arg5: memref<1x512xbf16, #tpu.memory_space<vmem>>, %arg6: memref<512x128xbf16, #tpu.memory_space<vmem>>, %arg7: memref<1x128xf32, #tpu.memory_space<vmem>>, %arg8: memref<8x128xf32, #tpu.memory_space<vmem>>) attributes {dimension_semantics = [#tpu.dimension_semantics<parallel>], iteration_bounds = array<i64: 1>, scalar_prefetch = 0 : i64, scratch_operands = 0 : i64, tpu.core_type = #tpu.core_type<tc>, window_params = [{transform_indices = @transform_0, window_bounds = array<i64: 3, 8, 32>}, {pipeline_mode = #tpu.pipeline_mode<synchronous>, transform_indices = @transform_1, window_bounds = array<i64: 32, 512>}, {pipeline_mode = #tpu.pipeline_mode<synchronous>, transform_indices = @transform_2, window_bounds = array<i64: 1, 512>}, {pipeline_mode = #tpu.pipeline_mode<synchronous>, transform_indices = @transform_3, window_bounds = array<i64: 512, 512>}, {pipeline_mode = #tpu.pipeline_mode<synchronous>, transform_indices = @transform_4, window_bounds = array<i64: 1, 512>}, {pipeline_mode = #tpu.pipeline_mode<synchronous>, transform_indices = @transform_5, window_bounds = array<i64: 512, 128>}, {pipeline_mode = #tpu.pipeline_mode<synchronous>, transform_indices = @transform_6, window_bounds = array<i64: 1, 128>}, {transform_indices = @transform_7, window_bounds = array<i64: 8, 128>}]} {
    %c0 = arith.constant 0 : index
    %c0_0 = arith.constant 0 : index
    %c0_1 = arith.constant 0 : index
    %0 = vector.load %arg1[%c0, %c0_0, %c0_1] : memref<3x8x32xf32, #tpu.memory_space<vmem>>, vector<1x8x32xf32>
    %1 = vector.shape_cast %0 : vector<1x8x32xf32> to vector<8x32xf32>
    %c1 = arith.constant 1 : index
    %c0_2 = arith.constant 0 : index
    %c0_3 = arith.constant 0 : index
    %2 = vector.load %arg1[%c1, %c0_2, %c0_3] : memref<3x8x32xf32, #tpu.memory_space<vmem>>, vector<1x8x32xf32>
    %3 = vector.shape_cast %2 : vector<1x8x32xf32> to vector<8x32xf32>
    %c2 = arith.constant 2 : index
    %c0_4 = arith.constant 0 : index
    %c0_5 = arith.constant 0 : index
    %4 = vector.load %arg1[%c2, %c0_4, %c0_5] : memref<3x8x32xf32, #tpu.memory_space<vmem>>, vector<1x8x32xf32>
    %5 = vector.shape_cast %4 : vector<1x8x32xf32> to vector<8x32xf32>
    %cst = arith.constant 2.000000e+01 : f32
    %6 = vector.broadcast %cst : f32 to vector<8x32xf32>
    %7 = arith.cmpf ogt, %3, %6 : vector<8x32xf32>
    %cst_6 = arith.constant 2.000000e+01 : f32
    %8 = vector.broadcast %cst_6 : f32 to vector<8x32xf32>
    %9 = arith.minimumf %3, %8 : vector<8x32xf32>
    %10 = math.exp %9 : vector<8x32xf32>
    %11 = math.log1p %10 : vector<8x32xf32>
    %12 = arith.select %7, %3, %11 : vector<8x32xi1>, vector<8x32xf32>
    %13 = arith.mulf %12, %5 : vector<8x32xf32>
    %14 = arith.addf %1, %13 : vector<8x32xf32>
    %c0_7 = arith.constant 0 : index
    %c0_8 = arith.constant 0 : index
    %15 = vector.load %arg3[%c0_7, %c0_8] : memref<1x512xbf16, #tpu.memory_space<vmem>>, vector<1x512xbf16>
    %c0_9 = arith.constant 0 : index
    %c0_10 = arith.constant 0 : index
    %16 = vector.load %arg5[%c0_9, %c0_10] : memref<1x512xbf16, #tpu.memory_space<vmem>>, vector<1x512xbf16>
    %17 = arith.truncf %14 : vector<8x32xf32> to vector<8x32xbf16>
    %c0_11 = arith.constant 0 : index
    %c0_12 = arith.constant 0 : index
    %18 = vector.load %arg2[%c0_11, %c0_12] : memref<32x512xbf16, #tpu.memory_space<vmem>>, vector<32x512xbf16>
    %cst_13 = arith.constant dense<0.000000e+00> : vector<8x512xf32>
    %19 = tpu.matmul %17, %18, %cst_13 {dimension_numbers = #tpu.dot_dimension_numbers<[1], [0], [0], [1], [0, 0, 1, 1], [], []>} : vector<8x32xbf16>, vector<32x512xbf16>, vector<8x512xf32> -> vector<8x512xf32>
    %20 = arith.truncf %19 : vector<8x512xf32> to vector<8x512xbf16>
    %21 = vector.broadcast %15 : vector<1x512xbf16> to vector<8x512xbf16>
    %22 = arith.addf %20, %21 : vector<8x512xbf16>
    %cst_14 = arith.constant 1.000980e-02 : bf16
    %23 = vector.broadcast %cst_14 : bf16 to vector<8x512xbf16>
    %24 = arith.mulf %23, %22 : vector<8x512xbf16>
    %25 = arith.maximumf %22, %24 : vector<8x512xbf16>
    %c0_15 = arith.constant 0 : index
    %c0_16 = arith.constant 0 : index
    %26 = vector.load %arg4[%c0_15, %c0_16] : memref<512x512xbf16, #tpu.memory_space<vmem>>, vector<512x512xbf16>
    %cst_17 = arith.constant dense<0.000000e+00> : vector<8x512xf32>
    %27 = tpu.matmul %25, %26, %cst_17 {dimension_numbers = #tpu.dot_dimension_numbers<[1], [0], [0], [1], [0, 0, 1, 1], [], []>} : vector<8x512xbf16>, vector<512x512xbf16>, vector<8x512xf32> -> vector<8x512xf32>
    %28 = arith.truncf %27 : vector<8x512xf32> to vector<8x512xbf16>
    %29 = vector.broadcast %16 : vector<1x512xbf16> to vector<8x512xbf16>
    %30 = arith.addf %28, %29 : vector<8x512xbf16>
    %cst_18 = arith.constant 1.000980e-02 : bf16
    %31 = vector.broadcast %cst_18 : bf16 to vector<8x512xbf16>
    %32 = arith.mulf %31, %30 : vector<8x512xbf16>
    %33 = arith.maximumf %30, %32 : vector<8x512xbf16>
    %c0_19 = arith.constant 0 : index
    %c0_20 = arith.constant 0 : index
    %34 = vector.load %arg6[%c0_19, %c0_20] : memref<512x128xbf16, #tpu.memory_space<vmem>>, vector<512x128xbf16>
    %cst_21 = arith.constant dense<0.000000e+00> : vector<8x128xf32>
    %35 = tpu.matmul %33, %34, %cst_21 {dimension_numbers = #tpu.dot_dimension_numbers<[1], [0], [0], [1], [0, 0, 1, 1], [], []>} : vector<8x512xbf16>, vector<512x128xbf16>, vector<8x128xf32> -> vector<8x128xf32>
    %c0_22 = arith.constant 0 : index
    %c0_23 = arith.constant 0 : index
    %36 = vector.load %arg7[%c0_22, %c0_23] : memref<1x128xf32, #tpu.memory_space<vmem>>, vector<1x128xf32>
    %37 = vector.broadcast %36 : vector<1x128xf32> to vector<8x128xf32>
    %38 = arith.addf %35, %37 : vector<8x128xf32>
    %39 = tpu.iota {dimensions = array<i32: 1>} : vector<8x128xi32>
    %c63_i32 = arith.constant 63 : i32
    %40 = vector.broadcast %c63_i32 : i32 to vector<8x128xi32>
    %41 = arith.cmpi slt, %39, %40 : vector<8x128xi32>
    %cst_24 = arith.constant 0.000000e+00 : f32
    %42 = vector.broadcast %cst_24 : f32 to vector<8x128xf32>
    %43 = arith.select %41, %38, %42 : vector<8x128xi1>, vector<8x128xf32>
    %c65_i32 = arith.constant 65 : i32
    %44 = tpu.dynamic_rotate %38 by %c65_i32 dim 1 : vector<8x128xf32>, i32 -> vector<8x128xf32>
    %cst_25 = arith.constant 0.000000e+00 : f32
    %45 = vector.broadcast %cst_25 : f32 to vector<8x128xf32>
    %46 = arith.select %41, %44, %45 : vector<8x128xi1>, vector<8x128xf32>
    %47 = arith.mulf %43, %43 : vector<8x128xf32>
    %c21_i32 = arith.constant 21 : i32
    %48 = tpu.dynamic_rotate %47 by %c21_i32 dim 1 : vector<8x128xf32>, i32 -> vector<8x128xf32>
    %49 = arith.addf %47, %48 : vector<8x128xf32>
    %c42_i32 = arith.constant 42 : i32
    %50 = tpu.dynamic_rotate %47 by %c42_i32 dim 1 : vector<8x128xf32>, i32 -> vector<8x128xf32>
    %51 = arith.addf %49, %50 : vector<8x128xf32>
    %c107_i32 = arith.constant 107 : i32
    %52 = tpu.dynamic_rotate %47 by %c107_i32 dim 1 : vector<8x128xf32>, i32 -> vector<8x128xf32>
    %53 = arith.addf %51, %52 : vector<8x128xf32>
    %c86_i32 = arith.constant 86 : i32
    %54 = tpu.dynamic_rotate %47 by %c86_i32 dim 1 : vector<8x128xf32>, i32 -> vector<8x128xf32>
    %55 = arith.addf %53, %54 : vector<8x128xf32>
    %cst_26 = arith.constant 1.000000e-24 : f32
    %56 = vector.broadcast %cst_26 : f32 to vector<8x128xf32>
    %57 = arith.maximumf %55, %56 : vector<8x128xf32>
    %58 = math.rsqrt %57 : vector<8x128xf32>
    %59 = arith.mulf %43, %58 : vector<8x128xf32>
    %60 = arith.mulf %59, %46 : vector<8x128xf32>
    %c21_i32_27 = arith.constant 21 : i32
    %61 = tpu.dynamic_rotate %60 by %c21_i32_27 dim 1 : vector<8x128xf32>, i32 -> vector<8x128xf32>
    %62 = arith.addf %60, %61 : vector<8x128xf32>
    %c42_i32_28 = arith.constant 42 : i32
    %63 = tpu.dynamic_rotate %60 by %c42_i32_28 dim 1 : vector<8x128xf32>, i32 -> vector<8x128xf32>
    %64 = arith.addf %62, %63 : vector<8x128xf32>
    %c107_i32_29 = arith.constant 107 : i32
    %65 = tpu.dynamic_rotate %60 by %c107_i32_29 dim 1 : vector<8x128xf32>, i32 -> vector<8x128xf32>
    %66 = arith.addf %64, %65 : vector<8x128xf32>
    %c86_i32_30 = arith.constant 86 : i32
    %67 = tpu.dynamic_rotate %60 by %c86_i32_30 dim 1 : vector<8x128xf32>, i32 -> vector<8x128xf32>
    %68 = arith.addf %66, %67 : vector<8x128xf32>
    %69 = arith.mulf %68, %59 : vector<8x128xf32>
    %70 = arith.subf %46, %69 : vector<8x128xf32>
    %71 = arith.mulf %70, %70 : vector<8x128xf32>
    %c21_i32_31 = arith.constant 21 : i32
    %72 = tpu.dynamic_rotate %71 by %c21_i32_31 dim 1 : vector<8x128xf32>, i32 -> vector<8x128xf32>
    %73 = arith.addf %71, %72 : vector<8x128xf32>
    %c42_i32_32 = arith.constant 42 : i32
    %74 = tpu.dynamic_rotate %71 by %c42_i32_32 dim 1 : vector<8x128xf32>, i32 -> vector<8x128xf32>
    %75 = arith.addf %73, %74 : vector<8x128xf32>
    %c107_i32_33 = arith.constant 107 : i32
    %76 = tpu.dynamic_rotate %71 by %c107_i32_33 dim 1 : vector<8x128xf32>, i32 -> vector<8x128xf32>
    %77 = arith.addf %75, %76 : vector<8x128xf32>
    %c86_i32_34 = arith.constant 86 : i32
    %78 = tpu.dynamic_rotate %71 by %c86_i32_34 dim 1 : vector<8x128xf32>, i32 -> vector<8x128xf32>
    %79 = arith.addf %77, %78 : vector<8x128xf32>
    %cst_35 = arith.constant 1.000000e-24 : f32
    %80 = vector.broadcast %cst_35 : f32 to vector<8x128xf32>
    %81 = arith.maximumf %79, %80 : vector<8x128xf32>
    %82 = math.rsqrt %81 : vector<8x128xf32>
    %83 = arith.mulf %70, %82 : vector<8x128xf32>
    %c21_i32_36 = arith.constant 21 : i32
    %84 = tpu.dynamic_rotate %59 by %c21_i32_36 dim 1 : vector<8x128xf32>, i32 -> vector<8x128xf32>
    %c21_i32_37 = arith.constant 21 : i32
    %85 = tpu.dynamic_rotate %83 by %c21_i32_37 dim 1 : vector<8x128xf32>, i32 -> vector<8x128xf32>
    %86 = arith.mulf %84, %83 : vector<8x128xf32>
    %87 = arith.mulf %59, %85 : vector<8x128xf32>
    %88 = arith.subf %86, %87 : vector<8x128xf32>
    %c63_i32_38 = arith.constant 63 : i32
    %89 = tpu.dynamic_rotate %59 by %c63_i32_38 dim 1 : vector<8x128xf32>, i32 -> vector<8x128xf32>
    %c63_i32_39 = arith.constant 63 : i32
    %90 = tpu.dynamic_rotate %83 by %c63_i32_39 dim 1 : vector<8x128xf32>, i32 -> vector<8x128xf32>
    %c105_i32 = arith.constant 105 : i32
    %91 = tpu.dynamic_rotate %59 by %c105_i32 dim 1 : vector<8x128xf32>, i32 -> vector<8x128xf32>
    %c105_i32_40 = arith.constant 105 : i32
    %92 = tpu.dynamic_rotate %83 by %c105_i32_40 dim 1 : vector<8x128xf32>, i32 -> vector<8x128xf32>
    %93 = arith.mulf %89, %92 : vector<8x128xf32>
    %94 = arith.mulf %91, %90 : vector<8x128xf32>
    %95 = arith.subf %93, %94 : vector<8x128xf32>
    %c42_i32_41 = arith.constant 42 : i32
    %96 = vector.broadcast %c42_i32_41 : i32 to vector<8x128xi32>
    %97 = arith.cmpi slt, %39, %96 : vector<8x128xi32>
    %c63_i32_42 = arith.constant 63 : i32
    %98 = vector.broadcast %c63_i32_42 : i32 to vector<8x128xi32>
    %99 = arith.cmpi slt, %39, %98 : vector<8x128xi32>
    %c105_i32_43 = arith.constant 105 : i32
    %100 = vector.broadcast %c105_i32_43 : i32 to vector<8x128xi32>
    %101 = arith.cmpi slt, %39, %100 : vector<8x128xi32>
    %102 = arith.select %101, %90, %95 : vector<8x128xi1>, vector<8x128xf32>
    %103 = arith.select %99, %88, %102 : vector<8x128xi1>, vector<8x128xf32>
    %104 = arith.select %97, %59, %103 : vector<8x128xi1>, vector<8x128xf32>
    %c0_44 = arith.constant 0 : index
    %c0_45 = arith.constant 0 : index
    %105 = vector.load %arg8[%c0_44, %c0_45] : memref<8x128xf32, #tpu.memory_space<vmem>>, vector<8x128xf32>
    tpu.vector_store %arg8[%c0_44, %c0_45], %104 {strides = array<i32>} : memref<8x128xf32, #tpu.memory_space<vmem>>, vector<8x128xf32>,
    return
  }
  func.func @transform_0(%arg0: i32) -> (i32, i32, i32) {
    %c0_i32 = arith.constant 0 : i32
    %c0_i32_0 = arith.constant 0 : i32
    %c0_i32_1 = arith.constant 0 : i32
    return %c0_i32, %arg0, %c0_i32_0 : i32, i32, i32
  }
  func.func @transform_1(%arg0: i32) -> (i32, i32) {
    %c0_i32 = arith.constant 0 : i32
    %c0_i32_0 = arith.constant 0 : i32
    %c0_i32_1 = arith.constant 0 : i32
    return %c0_i32, %c0_i32_0 : i32, i32
  }
  func.func @transform_2(%arg0: i32) -> (i32, i32) {
    %c0_i32 = arith.constant 0 : i32
    %c0_i32_0 = arith.constant 0 : i32
    %c0_i32_1 = arith.constant 0 : i32
    return %c0_i32, %c0_i32_0 : i32, i32
  }
  func.func @transform_3(%arg0: i32) -> (i32, i32) {
    %c0_i32 = arith.constant 0 : i32
    %c0_i32_0 = arith.constant 0 : i32
    %c0_i32_1 = arith.constant 0 : i32
    return %c0_i32, %c0_i32_0 : i32, i32
  }
  func.func @transform_4(%arg0: i32) -> (i32, i32) {
    %c0_i32 = arith.constant 0 : i32
    %c0_i32_0 = arith.constant 0 : i32
    %c0_i32_1 = arith.constant 0 : i32
    return %c0_i32, %c0_i32_0 : i32, i32
  }
  func.func @transform_5(%arg0: i32) -> (i32, i32) {
    %c0_i32 = arith.constant 0 : i32
    %c0_i32_0 = arith.constant 0 : i32
    %c0_i32_1 = arith.constant 0 : i32
    return %c0_i32, %c0_i32_0 : i32, i32
  }
  func.func @transform_6(%arg0: i32) -> (i32, i32) {
    %c0_i32 = arith.constant 0 : i32
    %c0_i32_0 = arith.constant 0 : i32
    %c0_i32_1 = arith.constant 0 : i32
    return %c0_i32, %c0_i32_0 : i32, i32
  }
  func.func @transform_7(%arg0: i32) -> (i32, i32) {
    %c0_i32 = arith.constant 0 : i32
    %c0_i32_0 = arith.constant 0 : i32
    return %arg0, %c0_i32 : i32, i32
  }
}

</mosaic_0001>

<bundles_post_ra>
// kernel: vposer_decoder.1
= control target key start
LH: loop header
LB: loop body
LE: loop exit
PB: predicated region body
PF: predicated region fallthrough
CT: control target
= control target key end

     0   :  { %12 = vsyncpa [#allocation3], 0  ;;  %s2824_s0 = inlined_call_operand.vmem [shape: f32[3,8,32], index: 0, kind: input, shape index: {}]   ;;  %s2825_s1 = inlined_call_operand.hbm [shape: bf16[32,512], index: 1, kind: input, shape index: {}]   ;;  %s2826_s2 = inlined_call_operand.vmem [shape: bf16[1,512], index: 2, kind: input, shape index: {}]   ;;  %s2827_s3 = inlined_call_operand.hbm [shape: bf16[512,512], index: 3, kind: input, shape index: {}]   ;;  %s2828_s4 = inlined_call_operand.vmem [shape: bf16[1,512], index: 4, kind: input, shape index: {}]   ;;  %s2829_s5 = inlined_call_operand.hbm [shape: bf16[512,128], index: 5, kind: input, shape index: {}]   ;;  %s2830_s6 = inlined_call_operand.vmem [shape: f32[1,128], index: 6, kind: input, shape index: {}]   ;;  %s2831_s7 = inlined_call_operand.vmem [shape: f32[8,128], index: 7, kind: output, shape index: {}]  }
   0x1   :  { %13 = vsyncpa [#allocation5], 0  ;;  %s35_s26 = sshll.u32 %s2827_s3, 4  ;;  %s2649_s27 = smov [#allocation4]   ;;  %s36_s26 = int_to_ptr.hbm [resolvable:$true] %s35_s26 }
   0x2   :  { %s37_s28 = sshll.u32 %s2649_s27, 4  ;;  %s20_s8 = sshll.u32 %s2825_s1, 4  ;;  %s38_s28 = int_to_ptr.vmem [resolvable:$true] %s37_s28  ;;  %s21_s8 = int_to_ptr.hbm [resolvable:$true] %s20_s8 }
   0x3   :  { %s2650_s9 = smov 256   ;;  %s2651_s10 = smov 16  }
   0x4   :  { %43 = dma.hbm_to_vmem [thread:$0]  %s36_s26, 16384, %s38_s28, [#allocation5], %s2650_s9, %s2650_s9, %s2651_s10  }
   0x5   :  { %s2652_s11 = smov [#allocation2]   ;;  %s50_s15 = sshll.u32 %s2829_s5, 4  ;;  %s51_s15 = int_to_ptr.hbm [resolvable:$true] %s50_s15 }
   0x6   :  { %s22_s12 = sshll.u32 %s2652_s11, 4  ;;  %s2653_s3 = smov [#allocation6]   ;;  %s23_s12 = int_to_ptr.vmem [resolvable:$true] %s22_s12 }
   0x7   :  { %28 = dma.hbm_to_vmem [thread:$0]  %s21_s8, 1024, %s23_s12, [#allocation3], %s2650_s9, %s2650_s9, %s2651_s10  }
   0x8   :  { %s52_s16 = sshll.u32 %s2653_s3, 4  ;;  %s2654_s17 = smov 64   ;;  %s53_s16 = int_to_ptr.vmem [resolvable:$true] %s52_s16 }
   0x9   :  { %s2655_s18 = smov 4  }
   0xa   :  { %58 = dma.hbm_to_vmem [thread:$0]  %s51_s15, 4096, %s53_s16, [#allocation5], %s2654_s17, %s2654_s17, %s2655_s18  }
   0xb   :  { %2645 = dma.done.wait [#allocation3], 1024  }
   0xc   :  { %2646 = vsyncadd [#allocation3], 4294966272 }
   0xd   :  { %2647 = dma.done.wait [#allocation5], 20480  }
   0xe   :  { %2648 = vsyncadd [#allocation5], 4294946816  ;;  %v1724_v0 = vld [vmem:[#allocation2 + $0x20] sm:$0xf]  ;;  %v2388_v1 = vld [vmem:[#allocation2 + $0x2c] sm:$0xf0] }
   0xf   :  { %v2386_v2 = vld [vmem:[#allocation2 + $0x24] sm:$0xf]  ;;  %v1725_v3 = vor.u32 %v2388_v1, %v1724_v0  ;;  %v1726_v4 = vld [vmem:[#allocation2 + $0x30] sm:$0xf0]  ;;  %v1732_v5 = vld [vmem:[#allocation2 + $0x28] sm:$0xf] }
  0x10   :  { %v2389_v6 = vld [vmem:[#allocation2 + $0x34] sm:$0xf0]  ;;  %v1729_v7 = vor.u32 %v2386_v2, %v1726_v4  ;;  %v2387_v9 = vld [vmem:[#allocation2 + $0x2c] sm:$0xf]  ;;  %v1734_v10 = vld [vmem:[#allocation2 + $0x38] sm:$0xf0] }
  0x11   :  { %v1733_v8 = vor.u32 %v2389_v6, %v1732_v5  ;;  %v1708_v11 = vld [vmem:[#allocation2] sm:$0xf]  ;;  %156 = vmatpush.bf16.msra.mxu0 %v1725_v3  ;;  %v1737_v12 = vor.u32 %v2387_v9, %v1734_v10  ;;  %v2384_v13 = vld [vmem:[#allocation2 + $0xc] sm:$0xf0]  ;;  %v2382_v14 = vld [vmem:[#allocation2 + $0x4] sm:$0xf] }
  0x12   :  { %v1710_v15 = vld [vmem:[#allocation2 + $0x10] sm:$0xf0]  ;;  %169 = vmatpush.bf16.msra.mxu1 %v1729_v7  ;;  %v1709_v16 = vor.u32 %v2384_v13, %v1708_v11  ;;  %v1716_v18 = vld [vmem:[#allocation2 + $0x8] sm:$0xf]  ;;  %v2385_v19 = vld [vmem:[#allocation2 + $0x14] sm:$0xf0] }
  0x13   :  { %182 = vmatpush.bf16.msra.mxu2 %v1733_v8  ;;  %v1713_v17 = vor.u32 %v2382_v14, %v1710_v15  ;;  %v2383_v20 = vld [vmem:[#allocation2 + $0xc] sm:$0xf]  ;;  %195 = vmatpush.bf16.msra.mxu3 %v1737_v12  ;;  %v1717_v21 = vor.u32 %v2385_v19, %v1716_v18  ;;  %v1718_v22 = vld [vmem:[#allocation2 + $0x18] sm:$0xf0]  ;;  %v2715_v23 = vld [vmem:[%s2824_s0 + $0x8] sm:$0xff]  ;;  %vm146_vm2 = vcmask 261120  }
  0x14   :  { %v1721_v24 = vor.u32 %v2383_v20, %v1718_v22  ;;  %v80_v25 = vmin.f32 %v2715_v23, 20.0  ;;  %v1856_v26 = vld [vmem:[#allocation4 + $0xe0] sm:$0xf]  ;;  %v2420_v27 = vld [vmem:[#allocation4 + $0xec] sm:$0xf0]  ;;  %vm79_vm0 = vcmp.gt.f32.partialorder %v2715_v23, 20.0 }
  0x15   :  { %157 = vmatpush.bf16.msra.mxu0 %v1709_v16  ;;  %v1984_v28 = vld [vmem:[#allocation4 + $0x1e0] sm:$0xf]  ;;  %v2452_v29 = vld [vmem:[#allocation4 + $0x1ec] sm:$0xf0]  ;;  %v1857_v31 = vor.u32 %v2420_v27, %v1856_v26  ;;  %s2656_s26 = smov 65   ;;  %s2658_s27 = smov 21  }
  0x16   :  { %170 = vmatpush.bf16.msra.mxu1 %v1713_v17  ;;  %v81_v30 = vmul.f32 1.442695, %v80_v25  ;;  %v1985_v32 = vor.u32 %v2452_v29, %v1984_v28  ;;  %v1840_v33 = vld [vmem:[#allocation4 + $0xc0] sm:$0xf]  ;;  %v2416_v34 = vld [vmem:[#allocation4 + $0xcc] sm:$0xf0] }
  0x17   :  { %183 = vmatpush.bf16.msra.mxu2 %v1717_v21  ;;  %196 = vmatpush.bf16.msra.mxu3 %v1721_v24  ;;  %v1968_v35 = vld [vmem:[#allocation4 + $0x1c0] sm:$0xf]  ;;  %v2448_v36 = vld [vmem:[#allocation4 + $0x1cc] sm:$0xf0]  ;;  %v1841_v38 = vor.u32 %v2416_v34, %v1840_v33  ;;  %v1705_v34 = vld [vmem:[%s2824_s0 + $0x10] sm:$0xff]  ;;  %s2659_s28 = smov 86  }
  0x18   :  { %v2112_v37 = vld [vmem:[#allocation4 + $0x2e0] sm:$0xf]  ;;  %2565 = vpow2.f32 %v81_v30  ;;  %v1969_v39 = vor.u32 %v2448_v36, %v1968_v35  ;;  %v2484_v40 = vld [vmem:[#allocation4 + $0x2ec] sm:$0xf0]  ;;  %s2660_s29 = smov 42   ;;  %s2661_s30 = smov 63  }
  0x19   :  { %1026 = vmatpush.bf16.msrb.mxu0 %v1857_v31  ;;  %v2240_v41 = vld [vmem:[#allocation4 + $0x3e0] sm:$0xf]  ;;  %v2516_v42 = vld [vmem:[#allocation4 + $0x3ec] sm:$0xf0]  ;;  %v2113_v43 = vor.u32 %v2484_v40, %v2112_v37  ;;  %s2662_s8 = smov 105  }
  0x1a   :  { %1039 = vmatpush.bf16.msrb.mxu1 %v1985_v32  ;;  %v2241_v44 = vor.u32 %v2516_v42, %v2240_v41  ;;  %v1824_v45 = vld [vmem:[#allocation4 + $0xa0] sm:$0xf]  ;;  %v2412_v46 = vld [vmem:[#allocation4 + $0xac] sm:$0xf0] }
  0x1b   :  { %v1952_v47 = vld [vmem:[#allocation4 + $0x1a0] sm:$0xf]  ;;  %v2444_v48 = vld [vmem:[#allocation4 + $0x1ac] sm:$0xf0]  ;;  %1052 = vmatpush.bf16.msrb.mxu2 %v2113_v43  ;;  %v1825_v55 = vor.u32 %v2412_v46, %v1824_v45 }
  0x1c   :  { %v2096_v49 = vld [vmem:[#allocation4 + $0x2c0] sm:$0xf]  ;;  %v2480_v50 = vld [vmem:[#allocation4 + $0x2cc] sm:$0xf0]  ;;  %1065 = vmatpush.bf16.msrb.mxu3 %v2241_v44  ;;  %v1953_v56 = vor.u32 %v2444_v48, %v1952_v47 }
  0x1d   :  { %v2097_v51 = vor.u32 %v2480_v50, %v2096_v49  ;;  %v2224_v52 = vld [vmem:[#allocation4 + $0x3c0] sm:$0xf]  ;;  %v2512_v53 = vld [vmem:[#allocation4 + $0x3cc] sm:$0xf0]  ;;  %1027 = vmatpush.bf16.msrb.mxu0 %v1841_v38  ;;  %v74_v49 = vld [vmem:[%s2824_s0] sm:$0xff] }
  0x1e   :  { %v1808_v54 = vld [vmem:[#allocation4 + $0x80] sm:$0xf]  ;;  %1040 = vmatpush.bf16.msrb.mxu1 %v1969_v39  ;;  %v2225_v57 = vor.u32 %v2512_v53, %v2224_v52  ;;  %v2408_v58 = vld [vmem:[#allocation4 + $0x8c] sm:$0xf0]  ;;  %v2566_v0 = vpop.eup %2565 }
  0x1f   :  { %v1936_v59 = vld [vmem:[#allocation4 + $0x180] sm:$0xf]  ;;  %v2440_v60 = vld [vmem:[#allocation4 + $0x18c] sm:$0xf0]  ;;  %v83_v2 = vadd.f32 1.0, %v2566_v0  ;;  %v86_v3 = vmul.f32 -0.5, %v2566_v0  ;;  %1053 = vmatpush.bf16.msrb.mxu2 %v2097_v51  ;;  %v1809_v7 = vor.u32 %v2408_v58, %v1808_v54 }
  0x20   :  { %v2080_v61 = vld [vmem:[#allocation4 + $0x2a0] sm:$0xf]  ;;  %v2476_v62 = vld [vmem:[#allocation4 + $0x2ac] sm:$0xf0]  ;;  %1066 = vmatpush.bf16.msrb.mxu3 %v2225_v57  ;;  %v1937_v8 = vor.u32 %v2440_v60, %v1936_v59  ;;  %v89_v16 = vand.u32 2147483647, %v2566_v0 }
  0x21   :  { %v2208_v63 = vld [vmem:[#allocation4 + $0x3a0] sm:$0xf]  ;;  %v2508_v1 = vld [vmem:[#allocation4 + $0x3ac] sm:$0xf0]  ;;  %v2081_v4 = vor.u32 %v2476_v62, %v2080_v61  ;;  %1028 = vmatpush.bf16.msrb.mxu0 %v1825_v55  ;;  %2567 = vlog2.f32 %v83_v2  ;;  %v87_v15 = vadd.f32 1.0, %v86_v3 }
  0x22   :  { %v2209_v5 = vor.u32 %v2508_v1, %v2208_v63  ;;  %v1792_v6 = vld [vmem:[#allocation4 + $0x60] sm:$0xf]  ;;  %1041 = vmatpush.bf16.msrb.mxu1 %v1953_v56  ;;  %v2404_v9 = vld [vmem:[#allocation4 + $0x6c] sm:$0xf0]  ;;  %vm2719_vm1 = vcmp.lt.f32.partialorder %v89_v16, 0.0004427343 }
  0x23   :  { %v2064_v10 = vld [vmem:[#allocation4 + $0x280] sm:$0xf]  ;;  %v2472_v11 = vld [vmem:[#allocation4 + $0x28c] sm:$0xf0]  ;;  %1054 = vmatpush.bf16.msrb.mxu2 %v2081_v4  ;;  %v1793_v22 = vor.u32 %v2404_v9, %v1792_v6  ;;  %v88_v31 = vmul.f32 %v2566_v0, %v87_v15  ;;  %v2418_v60 = vld [vmem:[#allocation4 + $0xe4] sm:$0xf] }
  0x24   :  { %v1920_v12 = vld [vmem:[#allocation4 + $0x160] sm:$0xf]  ;;  %v2436_v13 = vld [vmem:[#allocation4 + $0x16c] sm:$0xf0]  ;;  %1067 = vmatpush.bf16.msrb.mxu3 %v2209_v5  ;;  %v2065_v18 = vor.u32 %v2472_v11, %v2064_v10  ;;  %v1858_v61 = vld [vmem:[#allocation4 + $0xf0] sm:$0xf0] }
  0x25   :  { %v2192_v14 = vld [vmem:[#allocation4 + $0x380] sm:$0xf]  ;;  %v2504_v17 = vld [vmem:[#allocation4 + $0x38c] sm:$0xf0]  ;;  %1029 = vmatpush.bf16.msrb.mxu0 %v1809_v7  ;;  %v1921_v24 = vor.u32 %v2436_v13, %v1920_v12  ;;  %v2450_v63 = vld [vmem:[#allocation4 + $0x1e4] sm:$0xf] }
  0x26   :  { %v2193_v19 = vor.u32 %v2504_v17, %v2192_v14  ;;  %v1776_v20 = vld [vmem:[#allocation4 + $0x40] sm:$0xf]  ;;  %1042 = vmatpush.bf16.msrb.mxu1 %v1937_v8  ;;  %v2468_v25 = vld [vmem:[#allocation4 + $0x26c] sm:$0xf0]  ;;  %v1986_v0 = vld [vmem:[#allocation4 + $0x1f0] sm:$0xf0]  ;;  %v1861_v8 = vor.u32 %v2418_v60, %v1858_v61 }
  0x27   :  { %v2048_v21 = vld [vmem:[#allocation4 + $0x260] sm:$0xf]  ;;  %v2500_v27 = vld [vmem:[#allocation4 + $0x36c] sm:$0xf0]  ;;  %v2568_v33 = vpop.eup %2567  ;;  %1055 = vmatpush.bf16.msrb.mxu2 %v2065_v18  ;;  %v2414_v7 = vld [vmem:[#allocation4 + $0xc4] sm:$0xf]  ;;  %v1989_v9 = vor.u32 %v2450_v63, %v1986_v0 }
  0x28   :  { %v2176_v26 = vld [vmem:[#allocation4 + $0x360] sm:$0xf]  ;;  %v2400_v28 = vld [vmem:[#allocation4 + $0x4c] sm:$0xf0]  ;;  %1068 = vmatpush.bf16.msrb.mxu3 %v2193_v19  ;;  %v2049_v35 = vor.u32 %v2468_v25, %v2048_v21  ;;  %v85_v40 = vmul.f32 0.6931472, %v2568_v33 }
  0x29   :  { %v1904_v29 = vld [vmem:[#allocation4 + $0x140] sm:$0xf]  ;;  %v2432_v30 = vld [vmem:[#allocation4 + $0x14c] sm:$0xf0]  ;;  %v2177_v36 = vor.u32 %v2500_v27, %v2176_v26  ;;  %1030 = vmatpush.bf16.msrb.mxu0 %v1793_v22  ;;  %v1777_v41 = vor.u32 %v2400_v28, %v1776_v20  ;;  %v1842_v10 = vld [vmem:[#allocation4 + $0xd0] sm:$0xf0] }
  0x2a   :  { %v1760_v37 = vld [vmem:[#allocation4 + $0x20] sm:$0xf]  ;;  %v2464_v39 = vld [vmem:[#allocation4 + $0x24c] sm:$0xf0]  ;;  %1043 = vmatpush.bf16.msrb.mxu1 %v1921_v24  ;;  %v1905_v42 = vor.u32 %v2432_v30, %v1904_v29  ;;  %v91_v48 = vsel %vm2719_vm1, %v88_v31, %v85_v40  ;;  %v2446_v11 = vld [vmem:[#allocation4 + $0x1c4] sm:$0xf]  ;;  %v1845_v24 = vor.u32 %v2414_v7, %v1842_v10 }
  0x2b   :  { %v2032_v38 = vld [vmem:[#allocation4 + $0x240] sm:$0xf]  ;;  %v2496_v44 = vld [vmem:[#allocation4 + $0x34c] sm:$0xf0]  ;;  %v92_v50 = vsel %vm79_vm0, %v2715_v23, %v91_v48  ;;  %1056 = vmatpush.bf16.msrb.mxu2 %v2049_v35  ;;  %v1970_v12 = vld [vmem:[#allocation4 + $0x1d0] sm:$0xf0] }
  0x2c   :  { %v2160_v43 = vld [vmem:[#allocation4 + $0x340] sm:$0xf]  ;;  %v2396_v45 = vld [vmem:[#allocation4 + $0x2c] sm:$0xf0]  ;;  %1069 = vmatpush.bf16.msrb.mxu3 %v2177_v36  ;;  %v2033_v51 = vor.u32 %v2464_v39, %v2032_v38  ;;  %v93_v53 = vmul.f32 %v1705_v34, %v92_v50  ;;  %v2482_v19 = vld [vmem:[#allocation4 + $0x2e4] sm:$0xf]  ;;  %v1973_v25 = vor.u32 %v2446_v11, %v1970_v12 }
  0x2d   :  { %v1888_v46 = vld [vmem:[#allocation4 + $0x120] sm:$0xf]  ;;  %v2428_v47 = vld [vmem:[#allocation4 + $0x12c] sm:$0xf0]  ;;  %v2161_v52 = vor.u32 %v2496_v44, %v2160_v43  ;;  %1031 = vmatpush.bf16.msrb.mxu0 %v1777_v41  ;;  %v1761_v54 = vor.u32 %v2396_v45, %v1760_v37  ;;  %v2114_v20 = vld [vmem:[#allocation4 + $0x2f0] sm:$0xf0] }
  0x2e   :  { %1044 = vmatpush.bf16.msrb.mxu1 %v1905_v42  ;;  %v1889_v55 = vor.u32 %v2428_v47, %v1888_v46  ;;  %v1744_v56 = vld [vmem:[#allocation4] sm:$0xf]  ;;  %v2392_v57 = vld [vmem:[#allocation4 + $0xc] sm:$0xf0]  ;;  %v94_v62 = vadd.f32 %v93_v53, %v74_v49  ;;  %v2514_v21 = vld [vmem:[#allocation4 + $0x3e4] sm:$0xf]  ;;  %v2117_v32 = vor.u32 %v2482_v19, %v2114_v20 }
  0x2f   :  { %v1872_v58 = vld [vmem:[#allocation4 + $0x100] sm:$0xf]  ;;  %v2424_v59 = vld [vmem:[#allocation4 + $0x10c] sm:$0xf0]  ;;  %1057 = vmatpush.bf16.msrb.mxu2 %v2033_v51  ;;  %v1745_v5 = vor.u32 %v2392_v57, %v1744_v56  ;;  %v2242_v22 = vld [vmem:[#allocation4 + $0x3f0] sm:$0xf0] }
  0x30   :  { %v2016_v23 = vld [vmem:[#allocation4 + $0x220] sm:$0xf]  ;;  %1070 = vmatpush.bf16.msrb.mxu3 %v2161_v52  ;;  %v2460_v1 = vld [vmem:[#allocation4 + $0x22c] sm:$0xf0]  ;;  %v97_v4 = vpack.c.bf16 %v94_v62, %v94_v62  ;;  %v1873_v6 = vor.u32 %v2424_v59, %v1872_v58  ;;  %v2410_v26 = vld [vmem:[#allocation4 + $0xa4] sm:$0xf]  ;;  %v2245_v33 = vor.u32 %v2514_v21, %v2242_v22 }
  0x31   :  { %v2144_v2 = vld [vmem:[#allocation4 + $0x320] sm:$0xf]  ;;  %v2492_v3 = vld [vmem:[#allocation4 + $0x32c] sm:$0xf0]  ;;  %1032 = vmatpush.bf16.msrb.mxu0 %v1761_v54  ;;  %v2017_v13 = vor.u32 %v2460_v1, %v2016_v23  ;;  %v1826_v29 = vld [vmem:[#allocation4 + $0xb0] sm:$0xf0] }
  0x32   :  { %1045 = vmatpush.bf16.msrb.mxu1 %v1889_v55  ;;  %1738 = vmatmul.msk.bf16.vlgmr.msra.gmra.mxu0 %vm146_vm2, %v97_v4  ;;  %v2145_v14 = vor.u32 %v2492_v3, %v2144_v2  ;;  %v2000_v15 = vld [vmem:[#allocation4 + $0x200] sm:$0xf]  ;;  %v2456_v16 = vld [vmem:[#allocation4 + $0x20c] sm:$0xf0]  ;;  %v2442_v30 = vld [vmem:[#allocation4 + $0x1a4] sm:$0xf]  ;;  %v1829_v38 = vor.u32 %v2410_v26, %v1826_v29 }
  0x33   :  { %1739 = vmatmul.msk.bf16.vlgmr.msra.gmra.mxu1 %vm146_vm2, %v97_v4  ;;  %1740 = vmatmul.msk.bf16.vlgmr.msra.gmra.mxu2 %vm146_vm2, %v97_v4  ;;  %v2128_v17 = vld [vmem:[#allocation4 + $0x300] sm:$0xf]  ;;  %v2488_v18 = vld [vmem:[#allocation4 + $0x30c] sm:$0xf0]  ;;  %v2001_v27 = vor.u32 %v2456_v16, %v2000_v15  ;;  %v1954_v31 = vld [vmem:[#allocation4 + $0x1b0] sm:$0xf0] }
  0x34   :  { %1741 = vmatmul.msk.bf16.vlgmr.msra.gmra.mxu3 %vm146_vm2, %v97_v4  ;;  %1058 = vmatpush.bf16.msrb.mxu2 %v2017_v13  ;;  %v2129_v28 = vor.u32 %v2488_v18, %v2128_v17  ;;  %v2478_v34 = vld [vmem:[#allocation4 + $0x2c4] sm:$0xf]  ;;  %v2098_v35 = vld [vmem:[#allocation4 + $0x2d0] sm:$0xf0]  ;;  %v1957_v39 = vor.u32 %v2442_v30, %v1954_v31  ;;  %v95_v42 = vld [vmem:[%s2826_s2] sm:$0xf] }
  0x35   :  { %1033 = vmatpush.bf16.msrb.mxu0 %v1745_v5  ;;  %1071 = vmatpush.bf16.msrb.mxu3 %v2145_v14  ;;  %v2510_v36 = vld [vmem:[#allocation4 + $0x3c4] sm:$0xf]  ;;  %v2226_v37 = vld [vmem:[#allocation4 + $0x3d0] sm:$0xf0]  ;;  %v2101_v40 = vor.u32 %v2478_v34, %v2098_v35  ;;  %205 = vst [vmem:[#allocation1] ss:$9 sm:$0xff] %v95_v42 }
  0x36   :  { %1046 = vmatpush.bf16.msrb.mxu1 %v1873_v6  ;;  %v2229_v41 = vor.u32 %v2510_v36, %v2226_v37  ;;  %v2406_v43 = vld [vmem:[#allocation4 + $0x84] sm:$0xf]  ;;  %v1810_v44 = vld [vmem:[#allocation4 + $0x90] sm:$0xf0]  ;;  %v96_v14 = vld [vmem:[%s2828_s4] sm:$0xf] }
  0x37   :  { %v2438_v45 = vld [vmem:[#allocation4 + $0x184] sm:$0xf]  ;;  %v1813_v46 = vor.u32 %v2406_v43, %v1810_v44  ;;  %v1938_v47 = vld [vmem:[#allocation4 + $0x190] sm:$0xf0] }
  0x38   :  { %1059 = vmatpush.bf16.msrb.mxu2 %v2001_v27  ;;  %v1941_v48 = vor.u32 %v2438_v45, %v1938_v47  ;;  %v2474_v49 = vld [vmem:[#allocation4 + $0x2a4] sm:$0xf]  ;;  %v2082_v50 = vld [vmem:[#allocation4 + $0x2b0] sm:$0xf0] }
  0x39   :  { %1078 = vmatpush.bf16.msra.mxu0 %v1861_v8  ;;  %1072 = vmatpush.bf16.msrb.mxu3 %v2129_v28  ;;  %v2506_v51 = vld [vmem:[#allocation4 + $0x3a4] sm:$0xf]  ;;  %v2085_v52 = vor.u32 %v2474_v49, %v2082_v50  ;;  %v2210_v53 = vld [vmem:[#allocation4 + $0x3b0] sm:$0xf0] }
  0x3a   :  { %1091 = vmatpush.bf16.msra.mxu1 %v1989_v9  ;;  %v2213_v54 = vor.u32 %v2506_v51, %v2210_v53  ;;  %v2402_v55 = vld [vmem:[#allocation4 + $0x64] sm:$0xf]  ;;  %v1794_v56 = vld [vmem:[#allocation4 + $0x70] sm:$0xf0] }
  0x3b   :  { %v1797_v57 = vor.u32 %v2402_v55, %v1794_v56  ;;  %v2434_v58 = vld [vmem:[#allocation4 + $0x164] sm:$0xf]  ;;  %v1922_v59 = vld [vmem:[#allocation4 + $0x170] sm:$0xf0] }
  0x3c   :  { %1104 = vmatpush.bf16.msra.mxu2 %v2117_v32  ;;  %v1925_v60 = vor.u32 %v2434_v58, %v1922_v59  ;;  %v2470_v61 = vld [vmem:[#allocation4 + $0x284] sm:$0xf]  ;;  %v2066_v62 = vld [vmem:[#allocation4 + $0x290] sm:$0xf0]  ;;  %v2741_v5 = vld [vmem:[#allocation1] sm:$0xff] }
  0x3d   :  { %1079 = vmatpush.bf16.msra.mxu0 %v1845_v24  ;;  %1117 = vmatpush.bf16.msra.mxu3 %v2245_v33  ;;  %v2502_v63 = vld [vmem:[#allocation4 + $0x384] sm:$0xf]  ;;  %v2069_v0 = vor.u32 %v2470_v61, %v2066_v62  ;;  %v2194_v23 = vld [vmem:[#allocation4 + $0x390] sm:$0xf0]  ;;  %v2745_v7 = vld [vmem:[#allocation1 + $0x12] sm:$0xff]  ;;  %v210_v50 = vpack.i.b16 %v2741_v5, %v2741_v5 }
  0x3e   :  { %1092 = vmatpush.bf16.msra.mxu1 %v1973_v25  ;;  %v2197_v1 = vor.u32 %v2502_v63, %v2194_v23  ;;  %v2398_v2 = vld [vmem:[#allocation4 + $0x44] sm:$0xf]  ;;  %v1778_v3 = vld [vmem:[#allocation4 + $0x50] sm:$0xf0]  ;;  %v216_v56 = vpack.i.b16 %v2745_v7, %v2745_v7 }
  0x3f   :  { %v2430_v4 = vld [vmem:[#allocation4 + $0x144] sm:$0xf]  ;;  %v1781_v8 = vor.u32 %v2398_v2, %v1778_v3  ;;  %v1906_v9 = vld [vmem:[#allocation4 + $0x150] sm:$0xf0] }
  0x40   :  { %1105 = vmatpush.bf16.msra.mxu2 %v2101_v40  ;;  %v2743_v6 = vld [vmem:[#allocation1 + $0x9] sm:$0xff]  ;;  %v2747_v10 = vld [vmem:[#allocation1 + $0x1b] sm:$0xff]  ;;  %v1909_v11 = vor.u32 %v2430_v4, %v1906_v9  ;;  %v218_v63 = vperm.slane %v216_v56, 0 }
  0x41   :  { %1080 = vmatpush.bf16.msra.mxu0 %v1829_v38  ;;  %1118 = vmatpush.bf16.msra.mxu3 %v2229_v41  ;;  %v2466_v12 = vld [vmem:[#allocation4 + $0x264] sm:$0xf]  ;;  %v2050_v13 = vld [vmem:[#allocation4 + $0x270] sm:$0xf0]  ;;  %1237 = vst [vmem:[#allocation1] ss:$9 sm:$0xff] %v96_v14  ;;  %v213_v51 = vpack.i.b16 %v2743_v6, %v2743_v6 }
  0x42   :  { %1093 = vmatpush.bf16.msra.mxu1 %v1957_v39  ;;  %v2053_v15 = vor.u32 %v2466_v12, %v2050_v13  ;;  %v2498_v16 = vld [vmem:[#allocation4 + $0x364] sm:$0xf]  ;;  %v2178_v17 = vld [vmem:[#allocation4 + $0x370] sm:$0xf0]  ;;  %v228_v6 = vunpack.c.l.bf16 %v218_v63  ;;  %v1864_v14 = vld [vmem:[#allocation4 + $0xe8] sm:$0xf] }
  0x43   :  { %v2181_v18 = vor.u32 %v2498_v16, %v2178_v17  ;;  %v2394_v19 = vld [vmem:[#allocation4 + $0x24] sm:$0xf]  ;;  %v1762_v20 = vld [vmem:[#allocation4 + $0x30] sm:$0xf0]  ;;  %v215_v53 = vperm.slane %v213_v51, 0 }
  0x44   :  { %1106 = vmatpush.bf16.msra.mxu2 %v2085_v52  ;;  %v1765_v21 = vor.u32 %v2394_v19, %v1762_v20  ;;  %v2426_v22 = vld [vmem:[#allocation4 + $0x124] sm:$0xf]  ;;  %v1890_v24 = vld [vmem:[#allocation4 + $0x130] sm:$0xf0]  ;;  %v212_v52 = vperm.slane %v210_v50, 0 }
  0x45   :  { %1081 = vmatpush.bf16.msra.mxu0 %v1813_v46  ;;  %1119 = vmatpush.bf16.msra.mxu3 %v2213_v54  ;;  %v1893_v25 = vor.u32 %v2426_v22, %v1890_v24  ;;  %v2462_v26 = vld [vmem:[#allocation4 + $0x244] sm:$0xf]  ;;  %v2034_v27 = vld [vmem:[#allocation4 + $0x250] sm:$0xf0]  ;;  %v2453_v19 = vld [vmem:[#allocation4 + $0x1f4] sm:$0xf0] }
  0x46   :  { %1094 = vmatpush.bf16.msra.mxu1 %v1941_v48  ;;  %v2494_v28 = vld [vmem:[#allocation4 + $0x344] sm:$0xf]  ;;  %v2037_v29 = vor.u32 %v2462_v26, %v2034_v27  ;;  %v2162_v30 = vld [vmem:[#allocation4 + $0x350] sm:$0xf0]  ;;  %v226_v59 = vunpack.c.l.bf16 %v212_v52  ;;  %v2481_v56 = vld [vmem:[#allocation4 + $0x2d4] sm:$0xf0] }
  0x47   :  { %v2165_v31 = vor.u32 %v2494_v28, %v2162_v30  ;;  %v2390_v32 = vld [vmem:[#allocation4 + $0x4] sm:$0xf]  ;;  %v1746_v33 = vld [vmem:[#allocation4 + $0x10] sm:$0xf0]  ;;  %v1848_v28 = vld [vmem:[#allocation4 + $0xc8] sm:$0xf] }
  0x48   :  { %1107 = vmatpush.bf16.msra.mxu2 %v2069_v0  ;;  %v2422_v34 = vld [vmem:[#allocation4 + $0x104] sm:$0xf]  ;;  %v1749_v35 = vor.u32 %v2390_v32, %v1746_v33  ;;  %v1874_v36 = vld [vmem:[#allocation4 + $0x110] sm:$0xf0]  ;;  %v2417_v33 = vld [vmem:[#allocation4 + $0xd4] sm:$0xf0] }
  0x49   :  { %1082 = vmatpush.bf16.msra.mxu0 %v1797_v57  ;;  %1120 = vmatpush.bf16.msra.mxu3 %v2197_v1  ;;  %v1877_v37 = vor.u32 %v2422_v34, %v1874_v36  ;;  %v2458_v38 = vld [vmem:[#allocation4 + $0x224] sm:$0xf]  ;;  %v2018_v39 = vld [vmem:[#allocation4 + $0x230] sm:$0xf0]  ;;  %v219_v57 = vpack.i.b16 %v2747_v10, %v2747_v10  ;;  %v1976_v34 = vld [vmem:[#allocation4 + $0x1c8] sm:$0xf] }
  0x4a   :  { %1095 = vmatpush.bf16.msra.mxu1 %v1925_v60  ;;  %v2490_v40 = vld [vmem:[#allocation4 + $0x324] sm:$0xf]  ;;  %v2146_v41 = vld [vmem:[#allocation4 + $0x330] sm:$0xf0]  ;;  %v2021_v42 = vor.u32 %v2458_v38, %v2018_v39  ;;  %v227_v60 = vunpack.c.l.bf16 %v215_v53  ;;  %v2120_v38 = vld [vmem:[#allocation4 + $0x2e8] sm:$0xf] }
  0x4b   :  { %v2149_v43 = vor.u32 %v2490_v40, %v2146_v41  ;;  %v2454_v44 = vld [vmem:[#allocation4 + $0x204] sm:$0xf]  ;;  %v2002_v45 = vld [vmem:[#allocation4 + $0x210] sm:$0xf0]  ;;  %v221_v0 = vperm.slane %v219_v57, 0 }
  0x4c   :  { %1108 = vmatpush.bf16.msra.mxu2 %v2053_v15  ;;  %v2486_v46 = vld [vmem:[#allocation4 + $0x304] sm:$0xf]  ;;  %v2005_v47 = vor.u32 %v2454_v44, %v2002_v45  ;;  %v2130_v48 = vld [vmem:[#allocation4 + $0x310] sm:$0xf0]  ;;  %v2421_v15 = vld [vmem:[#allocation4 + $0xf4] sm:$0xf0] }
  0x4d   :  { %1083 = vmatpush.bf16.msra.mxu0 %v1781_v8  ;;  %1121 = vmatpush.bf16.msra.mxu3 %v2181_v18  ;;  %v2133_v49 = vor.u32 %v2486_v46, %v2130_v48  ;;  %v229_v8 = vunpack.c.l.bf16 %v221_v0  ;;  %v1992_v18 = vld [vmem:[#allocation4 + $0x1e8] sm:$0xf]  ;;  %v1865_v26 = vor.u32 %v2421_v15, %v1864_v14  ;;  %v2485_v39 = vld [vmem:[#allocation4 + $0x2f4] sm:$0xf0] }
  0x4e   :  { %1096 = vmatpush.bf16.msra.mxu1 %v1909_v11  ;;  %v1993_v27 = vor.u32 %v2453_v19, %v1992_v18  ;;  %v2248_v40 = vld [vmem:[#allocation4 + $0x3e8] sm:$0xf]  ;;  %v2517_v41 = vld [vmem:[#allocation4 + $0x3f4] sm:$0xf0]  ;;  %v2121_v52 = vor.u32 %v2485_v39, %v2120_v38 }
  0x4f   :  { %v1832_v46 = vld [vmem:[#allocation4 + $0xa8] sm:$0xf]  ;;  %v2249_v53 = vor.u32 %v2517_v41, %v2248_v40  ;;  %v2409_v63 = vld [vmem:[#allocation4 + $0x94] sm:$0xf0] }
  0x50   :  { %1109 = vmatpush.bf16.msra.mxu2 %v2037_v29  ;;  %v1960_v48 = vld [vmem:[#allocation4 + $0x1a8] sm:$0xf]  ;;  %v2505_v18 = vld [vmem:[#allocation4 + $0x394] sm:$0xf0] }
  0x51   :  { %1084 = vmatpush.bf16.msra.mxu0 %v1765_v21  ;;  %1122 = vmatpush.bf16.msra.mxu3 %v2165_v31  ;;  %v1944_v0 = vld [vmem:[#allocation4 + $0x188] sm:$0xf]  ;;  %v2429_v39 = vld [vmem:[#allocation4 + $0x134] sm:$0xf0] }
  0x52   :  { %1097 = vmatpush.bf16.msra.mxu1 %v1893_v25  ;;  %v2072_v15 = vld [vmem:[#allocation4 + $0x288] sm:$0xf] }
  0x53   :  { %v1896_v38 = vld [vmem:[#allocation4 + $0x128] sm:$0xf] }
  0x54   :  { %1110 = vmatpush.bf16.msra.mxu2 %v2021_v42  ;;  %v1849_v42 = vor.u32 %v2417_v33, %v1848_v28  ;;  %v2056_v28 = vld [vmem:[#allocation4 + $0x268] sm:$0xf]  ;;  %v2501_v33 = vld [vmem:[#allocation4 + $0x374] sm:$0xf0] }
  0x55   :  { %1085 = vmatpush.bf16.msra.mxu0 %v1749_v35  ;;  %1123 = vmatpush.bf16.msra.mxu3 %v2149_v43  ;;  %v2449_v35 = vld [vmem:[#allocation4 + $0x1d4] sm:$0xf0] }
  0x56   :  { %1098 = vmatpush.bf16.msra.mxu1 %v1877_v37  ;;  %v1977_v43 = vor.u32 %v2449_v35, %v1976_v34 }
  0x58   :  { %1111 = vmatpush.bf16.msra.mxu2 %v2005_v47  ;;  %v2413_v47 = vld [vmem:[#allocation4 + $0xb4] sm:$0xf0] }
  0x59   :  { %1124 = vmatpush.bf16.msra.mxu3 %v2133_v49  ;;  %v2445_v49 = vld [vmem:[#allocation4 + $0x1b4] sm:$0xf0] }
  0xaf   :  { %v159_v54 = vpop.f32.mrf.mxu0 }
  0xb0   :  { %v172_v55 = vpop.f32.mrf.mxu1 }
  0xb1   :  { %v202_v58 = vpack.c.bf16 %v172_v55, %v159_v54  ;;  %v1833_v54 = vor.u32 %v2413_v47, %v1832_v46  ;;  %v2104_v55 = vld [vmem:[#allocation4 + $0x2c8] sm:$0xf]  ;;  %v1897_v47 = vor.u32 %v2429_v39, %v1896_v38  ;;  %v2439_v38 = vld [vmem:[#allocation4 + $0x18c] sm:$0xf]  ;;  %v1946_v39 = vld [vmem:[#allocation4 + $0x198] sm:$0xf0] }
  0xb3   :  { %v222_v61 = vunpack.c.l.bf16 %v202_v58  ;;  %v223_v62 = vunpack.c.h.bf16 %v202_v58 }
  0xb5   :  { %v230_v23 = vadd.f32 %v226_v59, %v222_v61  ;;  %v231_v1 = vadd.f32 %v227_v60, %v223_v62  ;;  %v1961_v59 = vor.u32 %v2445_v49, %v1960_v48  ;;  %v2232_v60 = vld [vmem:[#allocation4 + $0x3c8] sm:$0xf]  ;;  %v2513_v61 = vld [vmem:[#allocation4 + $0x3d4] sm:$0xf0] }
  0xb6   :  { %v185_v3 = vpop.f32.mrf.mxu2  ;;  %v1816_v62 = vld [vmem:[#allocation4 + $0x88] sm:$0xf]  ;;  %v2393_v49 = vld [vmem:[#allocation4 + $0x14] sm:$0xf0] }
  0xb7   :  { %v234_v2 = vpack.c.bf16 %v231_v1, %v230_v23  ;;  %v198_v4 = vpop.f32.mrf.mxu3  ;;  %v161_v9 = vpop.f32.mrf.mxu0  ;;  %v2441_v23 = vld [vmem:[#allocation4 + $0x194] sm:$0xf0]  ;;  %v2105_v1 = vor.u32 %v2481_v56, %v2104_v55  ;;  %v1752_v48 = vld [vmem:[#allocation4 + $0x8] sm:$0xf]  ;;  %v2451_v56 = vld [vmem:[#allocation4 + $0x1ec] sm:$0xf] }
  0xb8   :  { %v203_v5 = vpack.c.bf16 %v198_v4, %v185_v3  ;;  %v174_v7 = vpop.f32.mrf.mxu1  ;;  %v2088_v3 = vld [vmem:[#allocation4 + $0x2a8] sm:$0xf]  ;;  %v1817_v4 = vor.u32 %v2409_v63, %v1816_v62  ;;  %v2509_v9 = vld [vmem:[#allocation4 + $0x3b4] sm:$0xf0] }
  0xb9   :  { %v236_v11 = vunpack.c.l.bf16 %v234_v2  ;;  %v237_v12 = vunpack.c.h.bf16 %v234_v2  ;;  %v2233_v2 = vor.u32 %v2513_v61, %v2232_v60  ;;  %v1800_v7 = vld [vmem:[#allocation4 + $0x68] sm:$0xf]  ;;  %v2461_v61 = vld [vmem:[#allocation4 + $0x234] sm:$0xf0] }
  0xba   :  { %v224_v10 = vunpack.c.l.bf16 %v203_v5  ;;  %v225_v13 = vunpack.c.h.bf16 %v203_v5  ;;  %v1945_v5 = vor.u32 %v2441_v23, %v1944_v0  ;;  %v2024_v60 = vld [vmem:[#allocation4 + $0x228] sm:$0xf]  ;;  %v2493_v63 = vld [vmem:[#allocation4 + $0x334] sm:$0xf0]  ;;  %v1753_v0 = vor.u32 %v2393_v49, %v1752_v48  ;;  %v2403_v48 = vld [vmem:[#allocation4 + $0x6c] sm:$0xf] }
  0xbb   :  { %v240_v16 = vmul.f32 0.010009766, %v236_v11  ;;  %v241_v17 = vmul.f32 0.010009766, %v237_v12  ;;  %v2152_v62 = vld [vmem:[#allocation4 + $0x328] sm:$0xf]  ;;  %v1802_v49 = vld [vmem:[#allocation4 + $0x78] sm:$0xf0] }
  0xbc   :  { %v232_v20 = vadd.f32 %v228_v6, %v224_v10  ;;  %v233_v21 = vadd.f32 %v229_v8, %v225_v13  ;;  %v2477_v6 = vld [vmem:[#allocation4 + $0x2b4] sm:$0xf0]  ;;  %v2216_v8 = vld [vmem:[#allocation4 + $0x3a8] sm:$0xf] }
  0xbd   :  { %v250_v22 = vmax.f32 %v236_v11, %v240_v16  ;;  %v251_v24 = vmax.f32 %v237_v12, %v241_v17  ;;  %v2405_v11 = vld [vmem:[#allocation4 + $0x74] sm:$0xf0]  ;;  %v1928_v12 = vld [vmem:[#allocation4 + $0x168] sm:$0xf]  ;;  %v2089_v13 = vor.u32 %v2477_v6, %v2088_v3  ;;  %v2217_v14 = vor.u32 %v2509_v9, %v2216_v8  ;;  %v2415_v3 = vld [vmem:[#allocation4 + $0xcc] sm:$0xf] }
  0xbe   :  { %v235_v25 = vpack.c.bf16 %v233_v21, %v232_v20  ;;  %v187_v29 = vpop.f32.mrf.mxu2  ;;  %v2437_v10 = vld [vmem:[#allocation4 + $0x174] sm:$0xf0]  ;;  %v2200_v17 = vld [vmem:[#allocation4 + $0x388] sm:$0xf]  ;;  %v1801_v19 = vor.u32 %v2405_v11, %v1800_v7  ;;  %v2025_v6 = vor.u32 %v2461_v61, %v2024_v60  ;;  %v2153_v8 = vor.u32 %v2493_v63, %v2152_v62  ;;  %v1978_v9 = vld [vmem:[#allocation4 + $0x1d8] sm:$0xf0] }
  0xbf   :  { %v200_v30 = vpop.f32.mrf.mxu3  ;;  %v2760_v31 = vpack.c.bf16 %v250_v22, %v250_v22  ;;  %v2762_v32 = vpack.c.bf16 %v251_v24, %v251_v24  ;;  %v2473_v16 = vld [vmem:[#allocation4 + $0x294] sm:$0xf0]  ;;  %v1929_v20 = vor.u32 %v2437_v10, %v1928_v12  ;;  %v1784_v21 = vld [vmem:[#allocation4 + $0x48] sm:$0xf]  ;;  %v1805_v60 = vor.u32 %v2403_v48, %v1802_v49  ;;  %v2399_v62 = vld [vmem:[#allocation4 + $0x4c] sm:$0xf] }
  0xc0   :  { %v238_v36 = vunpack.c.l.bf16 %v235_v25  ;;  %v239_v37 = vunpack.c.h.bf16 %v235_v25  ;;  %v2401_v22 = vld [vmem:[#allocation4 + $0x54] sm:$0xf0]  ;;  %v1912_v24 = vld [vmem:[#allocation4 + $0x148] sm:$0xf]  ;;  %v1786_v63 = vld [vmem:[#allocation4 + $0x58] sm:$0xf0] }
  0xc1   :  { %1034 = vmatmul.bf16.vlgmr.msrb.gmra.mxu0 %v2760_v31  ;;  %1047 = vmatmul.bf16.vlgmr.msrb.gmra.mxu1 %v2762_v32  ;;  %v2433_v25 = vld [vmem:[#allocation4 + $0x154] sm:$0xf0]  ;;  %v2184_v30 = vld [vmem:[#allocation4 + $0x368] sm:$0xf]  ;;  %v1785_v34 = vor.u32 %v2401_v22, %v1784_v21  ;;  %v1834_v22 = vld [vmem:[#allocation4 + $0xb8] sm:$0xf0] }
  0xc2   :  { %1130 = vmatpush.bf16.msrb.mxu0 %v1865_v26  ;;  %1143 = vmatpush.bf16.msrb.mxu1 %v1993_v27  ;;  %v242_v44 = vmul.f32 0.010009766, %v238_v36  ;;  %v243_v45 = vmul.f32 0.010009766, %v239_v37  ;;  %v2073_v26 = vor.u32 %v2473_v16, %v2072_v15  ;;  %v2201_v27 = vor.u32 %v2505_v18, %v2200_v17  ;;  %v2469_v29 = vld [vmem:[#allocation4 + $0x274] sm:$0xf0]  ;;  %v2008_v7 = vld [vmem:[#allocation4 + $0x208] sm:$0xf] }
  0xc3   :  { %v1913_v35 = vor.u32 %v2433_v25, %v1912_v24  ;;  %v2057_v40 = vor.u32 %v2469_v29, %v2056_v28  ;;  %v2185_v41 = vor.u32 %v2501_v33, %v2184_v30  ;;  %v2457_v11 = vld [vmem:[#allocation4 + $0x214] sm:$0xf0]  ;;  %v2136_v12 = vld [vmem:[#allocation4 + $0x308] sm:$0xf]  ;;  %v2515_v15 = vld [vmem:[#allocation4 + $0x3ec] sm:$0xf] }
  0xc4   :  { %v252_v50 = vmax.f32 %v238_v36, %v242_v44  ;;  %v253_v51 = vmax.f32 %v239_v37, %v243_v45  ;;  %v1768_v36 = vld [vmem:[#allocation4 + $0x28] sm:$0xf]  ;;  %v2397_v37 = vld [vmem:[#allocation4 + $0x34] sm:$0xf0]  ;;  %v2250_v16 = vld [vmem:[#allocation4 + $0x3f8] sm:$0xf0] }
  0xc5   :  { %v2168_v44 = vld [vmem:[#allocation4 + $0x348] sm:$0xf]  ;;  %v2497_v45 = vld [vmem:[#allocation4 + $0x354] sm:$0xf0]  ;;  %v1769_v46 = vor.u32 %v2397_v37, %v1768_v36  ;;  %v2443_v24 = vld [vmem:[#allocation4 + $0x1ac] sm:$0xf] }
  0xc6   :  { %1131 = vmatpush.bf16.msrb.mxu0 %v1849_v42  ;;  %1144 = vmatpush.bf16.msrb.mxu1 %v1977_v43  ;;  %v2766_v57 = vpack.c.bf16 %v252_v50, %v252_v50  ;;  %v2768_v58 = vpack.c.bf16 %v253_v51, %v253_v51  ;;  %v2040_v42 = vld [vmem:[#allocation4 + $0x248] sm:$0xf]  ;;  %v2465_v43 = vld [vmem:[#allocation4 + $0x254] sm:$0xf0]  ;;  %v2169_v55 = vor.u32 %v2497_v45, %v2168_v44  ;;  %v1962_v25 = vld [vmem:[#allocation4 + $0x1b8] sm:$0xf0] }
  0xc7   :  { %v1880_v50 = vld [vmem:[#allocation4 + $0x108] sm:$0xf]  ;;  %v2425_v51 = vld [vmem:[#allocation4 + $0x114] sm:$0xf0]  ;;  %v2479_v28 = vld [vmem:[#allocation4 + $0x2cc] sm:$0xf] }
  0xc8   :  { %1060 = vmatmul.bf16.vlgmr.msrb.gmra.mxu2 %v2766_v57  ;;  %1073 = vmatmul.bf16.vlgmr.msrb.gmra.mxu3 %v2768_v58  ;;  %v1881_v23 = vor.u32 %v2425_v51, %v1880_v50  ;;  %v2489_v10 = vld [vmem:[#allocation4 + $0x314] sm:$0xf0]  ;;  %v2106_v29 = vld [vmem:[#allocation4 + $0x2d8] sm:$0xf0]  ;;  %v2511_v30 = vld [vmem:[#allocation4 + $0x3cc] sm:$0xf] }
  0xc9   :  { %1156 = vmatpush.bf16.msrb.mxu2 %v2121_v52  ;;  %1169 = vmatpush.bf16.msrb.mxu3 %v2249_v53  ;;  %v2419_v52 = vld [vmem:[#allocation4 + $0xec] sm:$0xf]  ;;  %v1866_v53 = vld [vmem:[#allocation4 + $0xf8] sm:$0xf0]  ;;  %v2137_v21 = vor.u32 %v2489_v10, %v2136_v12 }
  0xca   :  { %1132 = vmatpush.bf16.msrb.mxu0 %v1833_v54  ;;  %1145 = vmatpush.bf16.msrb.mxu1 %v1961_v59  ;;  %v2041_v54 = vor.u32 %v2465_v43, %v2040_v42  ;;  %v1994_v59 = vld [vmem:[#allocation4 + $0x1f8] sm:$0xf0]  ;;  %v2407_v36 = vld [vmem:[#allocation4 + $0x8c] sm:$0xf] }
  0xcb   :  { %v2234_v33 = vld [vmem:[#allocation4 + $0x3d8] sm:$0xf0]  ;;  %v2475_v42 = vld [vmem:[#allocation4 + $0x2ac] sm:$0xf] }
  0xcc   :  { %v1818_v37 = vld [vmem:[#allocation4 + $0x98] sm:$0xf0]  ;;  %v2507_v44 = vld [vmem:[#allocation4 + $0x3ac] sm:$0xf] }
  0xcd   :  { %1157 = vmatpush.bf16.msrb.mxu2 %v2105_v1  ;;  %1170 = vmatpush.bf16.msrb.mxu3 %v2233_v2  ;;  %v1869_v1 = vor.u32 %v2419_v52, %v1866_v53  ;;  %v1997_v2 = vor.u32 %v2451_v56, %v1994_v59  ;;  %v2090_v43 = vld [vmem:[#allocation4 + $0x2b8] sm:$0xf0]  ;;  %v2435_v50 = vld [vmem:[#allocation4 + $0x16c] sm:$0xf] }
  0xce   :  { %1133 = vmatpush.bf16.msrb.mxu0 %v1817_v4  ;;  %1146 = vmatpush.bf16.msrb.mxu1 %v1945_v5  ;;  %v1850_v4 = vld [vmem:[#allocation4 + $0xd8] sm:$0xf0]  ;;  %v2447_v5 = vld [vmem:[#allocation4 + $0x1cc] sm:$0xf]  ;;  %v2093_v52 = vor.u32 %v2475_v42, %v2090_v43 }
  0xcf   :  { %v1853_v17 = vor.u32 %v2415_v3, %v1850_v4  ;;  %v1981_v18 = vor.u32 %v2447_v5, %v1978_v9  ;;  %v2218_v45 = vld [vmem:[#allocation4 + $0x3b8] sm:$0xf0]  ;;  %v2503_v56 = vld [vmem:[#allocation4 + $0x38c] sm:$0xf] }
  0xd0   :  { %v1930_v51 = vld [vmem:[#allocation4 + $0x178] sm:$0xf0]  ;;  %v2221_v53 = vor.u32 %v2507_v44, %v2218_v45  ;;  %v2467_v3 = vld [vmem:[#allocation4 + $0x26c] sm:$0xf] }
  0xd1   :  { %1158 = vmatpush.bf16.msrb.mxu2 %v2089_v13  ;;  %1171 = vmatpush.bf16.msrb.mxu3 %v2217_v14  ;;  %v2483_v13 = vld [vmem:[#allocation4 + $0x2ec] sm:$0xf]  ;;  %v2122_v14 = vld [vmem:[#allocation4 + $0x2f8] sm:$0xf0]  ;;  %v1933_v61 = vor.u32 %v2435_v50, %v1930_v51 }
  0xd2   :  { %1086 = vmatmul.bf16.vlgmr.msra.gmra.mxu0 %v2760_v31  ;;  %1099 = vmatmul.bf16.vlgmr.msra.gmra.mxu1 %v2762_v32  ;;  %v2202_v59 = vld [vmem:[#allocation4 + $0x398] sm:$0xf0]  ;;  %v2499_v5 = vld [vmem:[#allocation4 + $0x36c] sm:$0xf] }
  0xd3   :  { %1134 = vmatpush.bf16.msrb.mxu0 %v1801_v19  ;;  %1147 = vmatpush.bf16.msrb.mxu1 %v1929_v20  ;;  %v2411_v19 = vld [vmem:[#allocation4 + $0xac] sm:$0xf]  ;;  %v2009_v20 = vor.u32 %v2457_v11, %v2008_v7  ;;  %v2058_v4 = vld [vmem:[#allocation4 + $0x278] sm:$0xf0] }
  0xd4   :  { %v2395_v7 = vld [vmem:[#allocation4 + $0x2c] sm:$0xf]  ;;  %v1770_v11 = vld [vmem:[#allocation4 + $0x38] sm:$0xf0] }
  0xd5   :  { %1159 = vmatpush.bf16.msrb.mxu2 %v2073_v26  ;;  %1172 = vmatpush.bf16.msrb.mxu3 %v2201_v27  ;;  %v2125_v26 = vor.u32 %v2483_v13, %v2122_v14  ;;  %v2253_v27 = vor.u32 %v2515_v15, %v2250_v16  ;;  %v2427_v12 = vld [vmem:[#allocation4 + $0x12c] sm:$0xf]  ;;  %v1898_v10 = vld [vmem:[#allocation4 + $0x138] sm:$0xf0]  ;;  %v2061_v13 = vor.u32 %v2467_v3, %v2058_v4  ;;  %v1239_v4 = vld [vmem:[#allocation1 + $0x9] sm:$0xff] }
  0xd6   :  { %v2463_v15 = vld [vmem:[#allocation4 + $0x24c] sm:$0xf]  ;;  %v2042_v16 = vld [vmem:[#allocation4 + $0x258] sm:$0xf0] }
  0xd7   :  { %1135 = vmatpush.bf16.msrb.mxu0 %v1785_v34  ;;  %1148 = vmatpush.bf16.msrb.mxu1 %v1913_v35  ;;  %v1837_v34 = vor.u32 %v2411_v19, %v1834_v22  ;;  %v1965_v35 = vor.u32 %v2443_v24, %v1962_v25  ;;  %v1773_v19 = vor.u32 %v2395_v7, %v1770_v11  ;;  %v1754_v22 = vld [vmem:[#allocation4 + $0x18] sm:$0xf0]  ;;  %v2423_v24 = vld [vmem:[#allocation4 + $0x10c] sm:$0xf] }
  0xd8   :  { %1112 = vmatmul.bf16.vlgmr.msra.gmra.mxu2 %v2766_v57  ;;  %1125 = vmatmul.bf16.vlgmr.msra.gmra.mxu3 %v2768_v58  ;;  %v1882_v25 = vld [vmem:[#allocation4 + $0x118] sm:$0xf0]  ;;  %v2523_v48 = vld [vmem:[#allocation6 + $0x28] sm:$0xff]  ;;  %v1245_v7 = vpack.i.b16 %v1239_v4, %v1239_v4 }
  0xd9   :  { %1160 = vmatpush.bf16.msrb.mxu2 %v2057_v40  ;;  %1173 = vmatpush.bf16.msrb.mxu3 %v2185_v41  ;;  %v2109_v40 = vor.u32 %v2479_v28, %v2106_v29  ;;  %v2237_v41 = vor.u32 %v2511_v30, %v2234_v33  ;;  %v2459_v28 = vld [vmem:[#allocation4 + $0x22c] sm:$0xf]  ;;  %v2026_v29 = vld [vmem:[#allocation4 + $0x238] sm:$0xf0] }
  0xda   :  { %v2491_v30 = vld [vmem:[#allocation4 + $0x32c] sm:$0xf]  ;;  %v2154_v33 = vld [vmem:[#allocation4 + $0x338] sm:$0xf0] }
  0xdb   :  { %1136 = vmatpush.bf16.msrb.mxu0 %v1769_v46  ;;  %1149 = vmatpush.bf16.msrb.mxu1 %v1897_v47  ;;  %v1821_v46 = vor.u32 %v2407_v36, %v1818_v37  ;;  %v1949_v47 = vor.u32 %v2439_v38, %v1946_v39  ;;  %v2029_v36 = vor.u32 %v2459_v28, %v2026_v29  ;;  %v2455_v38 = vld [vmem:[#allocation4 + $0x20c] sm:$0xf]  ;;  %v2010_v39 = vld [vmem:[#allocation4 + $0x218] sm:$0xf0] }
  0xdc   :  { %v2157_v37 = vor.u32 %v2491_v30, %v2154_v33  ;;  %v2013_v42 = vor.u32 %v2455_v38, %v2010_v39  ;;  %v2525_v44 = vld [vmem:[#allocation6 + $0x38] sm:$0xff]  ;;  %v2531_v49 = vld [vmem:[#allocation6 + $0x68] sm:$0xff] }
  0xdd   :  { %1161 = vmatpush.bf16.msrb.mxu2 %v2041_v54  ;;  %1174 = vmatpush.bf16.msrb.mxu3 %v2169_v55  ;;  %v2471_v54 = vld [vmem:[#allocation4 + $0x28c] sm:$0xf]  ;;  %v2074_v55 = vld [vmem:[#allocation4 + $0x298] sm:$0xf0] }
  0xde   :  { %v2533_v45 = vld [vmem:[#allocation6 + $0x78] sm:$0xff]  ;;  %v2547_v38 = vld [vmem:[#allocation6 + $0xe8] sm:$0xff] }
  0xdf   :  { %1137 = vmatpush.bf16.msrb.mxu0 %v1753_v0  ;;  %1150 = vmatpush.bf16.msrb.mxu1 %v1881_v23  ;;  %v2431_v0 = vld [vmem:[#allocation4 + $0x14c] sm:$0xf]  ;;  %v1914_v23 = vld [vmem:[#allocation4 + $0x158] sm:$0xf0] }
  0xe0   :  { %v1917_v9 = vor.u32 %v2431_v0, %v1914_v23  ;;  %v1238_v3 = vld [vmem:[#allocation1] sm:$0xff] }
  0xe1   :  { %1162 = vmatpush.bf16.msrb.mxu2 %v2025_v6  ;;  %1175 = vmatpush.bf16.msrb.mxu3 %v2153_v8  ;;  %v2186_v6 = vld [vmem:[#allocation4 + $0x378] sm:$0xf0]  ;;  %v1789_v8 = vor.u32 %v2399_v62, %v1786_v63  ;;  %v2518_v62 = vld [vmem:[#allocation6] sm:$0xff] }
  0xe2   :  { %1138 = vmatmul.bf16.vlgmr.msrb.gmra.mxu0 %v2760_v31  ;;  %1151 = vmatmul.bf16.vlgmr.msrb.gmra.mxu1 %v2762_v32  ;;  %v2189_v14 = vor.u32 %v2499_v5, %v2186_v6  ;;  %v2526_v63 = vld [vmem:[#allocation6 + $0x40] sm:$0xff] }
  0xe3   :  { %1182 = vmatpush.bf16.msra.mxu0 %v1869_v1  ;;  %1195 = vmatpush.bf16.msra.mxu1 %v1997_v2  ;;  %v2077_v1 = vor.u32 %v2471_v54, %v2074_v55  ;;  %v2205_v2 = vor.u32 %v2503_v56, %v2202_v59  ;;  %v2519_v56 = vld [vmem:[#allocation6 + $0x8] sm:$0xff] }
  0xe4   :  { %v2527_v59 = vld [vmem:[#allocation6 + $0x48] sm:$0xff] }
  0xe5   :  { %1163 = vmatpush.bf16.msrb.mxu2 %v2009_v20  ;;  %1176 = vmatpush.bf16.msrb.mxu3 %v2137_v21  ;;  %v1901_v20 = vor.u32 %v2427_v12, %v1898_v10  ;;  %v2391_v21 = vld [vmem:[#allocation4 + $0xc] sm:$0xf] }
  0xe7   :  { %1183 = vmatpush.bf16.msra.mxu0 %v1853_v17  ;;  %1196 = vmatpush.bf16.msra.mxu1 %v1981_v18  ;;  %v2495_v17 = vld [vmem:[#allocation4 + $0x34c] sm:$0xf]  ;;  %v2170_v18 = vld [vmem:[#allocation4 + $0x358] sm:$0xf0] }
  0xe8   :  { %1164 = vmatmul.bf16.vlgmr.msrb.gmra.mxu2 %v2766_v57  ;;  %1177 = vmatmul.bf16.vlgmr.msrb.gmra.mxu3 %v2768_v58 }
  0xe9   :  { %1208 = vmatpush.bf16.msra.mxu2 %v2125_v26  ;;  %1221 = vmatpush.bf16.msra.mxu3 %v2253_v27  ;;  %v2045_v26 = vor.u32 %v2463_v15, %v2042_v16  ;;  %v2173_v27 = vor.u32 %v2495_v17, %v2170_v18  ;;  %v1247_v16 = vperm.slane %v1245_v7, 0  ;;  %v2541_v17 = vld [vmem:[#allocation6 + $0xb8] sm:$0xff] }
  0xea   :  { %v2549_v18 = vld [vmem:[#allocation6 + $0xf8] sm:$0xff] }
  0xeb   :  { %1184 = vmatpush.bf16.msra.mxu0 %v1837_v34  ;;  %1197 = vmatpush.bf16.msra.mxu1 %v1965_v35  ;;  %v1757_v34 = vor.u32 %v2391_v21, %v1754_v22  ;;  %v1885_v35 = vor.u32 %v2423_v24, %v1882_v25  ;;  %v2540_v21 = vld [vmem:[#allocation6 + $0xb0] sm:$0xff]  ;;  %v1259_v28 = vunpack.c.l.bf16 %v1247_v16 }
  0xec   :  { %v2548_v22 = vld [vmem:[#allocation6 + $0xf0] sm:$0xff] }
  0xed   :  { %1209 = vmatpush.bf16.msra.mxu2 %v2109_v40  ;;  %1222 = vmatpush.bf16.msra.mxu3 %v2237_v41  ;;  %v2487_v40 = vld [vmem:[#allocation4 + $0x30c] sm:$0xf]  ;;  %v2138_v41 = vld [vmem:[#allocation4 + $0x318] sm:$0xf0] }
  0xee   :  { %v2141_v43 = vor.u32 %v2487_v40, %v2138_v41 }
  0xef   :  { %1185 = vmatpush.bf16.msra.mxu0 %v1821_v46  ;;  %1198 = vmatpush.bf16.msra.mxu1 %v1949_v47  ;;  %v2524_v46 = vld [vmem:[#allocation6 + $0x30] sm:$0xff] }
  0xf0   :  { %v2532_v47 = vld [vmem:[#allocation6 + $0x70] sm:$0xff] }
  0xf1   :  { %1210 = vmatpush.bf16.msra.mxu2 %v2093_v52  ;;  %1223 = vmatpush.bf16.msra.mxu3 %v2221_v53  ;;  %v2520_v52 = vld [vmem:[#allocation6 + $0x10] sm:$0xff] }
  0xf2   :  { %v2528_v53 = vld [vmem:[#allocation6 + $0x50] sm:$0xff] }
  0xf3   :  { %1186 = vmatpush.bf16.msra.mxu0 %v1805_v60  ;;  %1199 = vmatpush.bf16.msra.mxu1 %v1933_v61 }
  0xf5   :  { %1211 = vmatpush.bf16.msra.mxu2 %v2077_v1  ;;  %1224 = vmatpush.bf16.msra.mxu3 %v2205_v2 }
  0xf7   :  { %1187 = vmatpush.bf16.msra.mxu0 %v1789_v8  ;;  %1200 = vmatpush.bf16.msra.mxu1 %v1917_v9  ;;  %v1242_v9 = vpack.i.b16 %v1238_v3, %v1238_v3 }
  0xf9   :  { %1212 = vmatpush.bf16.msra.mxu2 %v2061_v13  ;;  %1225 = vmatpush.bf16.msra.mxu3 %v2189_v14  ;;  %v1244_v15 = vperm.slane %v1242_v9, 0 }
  0xfb   :  { %1188 = vmatpush.bf16.msra.mxu0 %v1773_v19  ;;  %1201 = vmatpush.bf16.msra.mxu1 %v1901_v20 }
  0xfd   :  { %1213 = vmatpush.bf16.msra.mxu2 %v2045_v26  ;;  %1226 = vmatpush.bf16.msra.mxu3 %v2173_v27  ;;  %v1258_v27 = vunpack.c.l.bf16 %v1244_v15 }
  0xff   :  { %1189 = vmatpush.bf16.msra.mxu0 %v1757_v34  ;;  %1202 = vmatpush.bf16.msra.mxu1 %v1885_v35 }
 0x101   :  { %1214 = vmatpush.bf16.msra.mxu2 %v2029_v36  ;;  %1227 = vmatpush.bf16.msra.mxu3 %v2157_v37  ;;  %v2539_v37 = vld [vmem:[#allocation6 + $0xa8] sm:$0xff] }
 0x102   :  { %1190 = vmatmul.bf16.vlgmr.msra.gmra.mxu0 %v2760_v31  ;;  %1203 = vmatmul.bf16.vlgmr.msra.gmra.mxu1 %v2762_v32  ;;  %v2522_v31 = vld [vmem:[#allocation6 + $0x20] sm:$0xff] }
 0x103   :  { %1550 = vmatpush.bf16.msrb.mxu0 %v2525_v44  ;;  %1563 = vmatpush.bf16.msrb.mxu1 %v2533_v45  ;;  %v2530_v32 = vld [vmem:[#allocation6 + $0x60] sm:$0xff] }
 0x104   :  { %v2538_v44 = vld [vmem:[#allocation6 + $0xa0] sm:$0xff] }
 0x105   :  { %1215 = vmatpush.bf16.msra.mxu2 %v2013_v42  ;;  %1228 = vmatpush.bf16.msra.mxu3 %v2141_v43  ;;  %v2546_v45 = vld [vmem:[#allocation6 + $0xe0] sm:$0xff] }
 0x107   :  { %1551 = vmatpush.bf16.msrb.mxu0 %v2524_v46  ;;  %1564 = vmatpush.bf16.msrb.mxu1 %v2532_v47 }
 0x108   :  { %1216 = vmatmul.bf16.vlgmr.msra.gmra.mxu2 %v2766_v57  ;;  %1229 = vmatmul.bf16.vlgmr.msra.gmra.mxu3 %v2768_v58  ;;  %v2521_v57 = vld [vmem:[#allocation6 + $0x18] sm:$0xff] }
 0x109   :  { %v2529_v58 = vld [vmem:[#allocation6 + $0x58] sm:$0xff]  ;;  %1576 = vmatpush.bf16.msrb.mxu2 %v2541_v17  ;;  %1589 = vmatpush.bf16.msrb.mxu3 %v2549_v18 }
 0x10b   :  { %1552 = vmatpush.bf16.msrb.mxu0 %v2523_v48  ;;  %1565 = vmatpush.bf16.msrb.mxu1 %v2531_v49 }
 0x10d   :  { %1577 = vmatpush.bf16.msrb.mxu2 %v2540_v21  ;;  %1590 = vmatpush.bf16.msrb.mxu3 %v2548_v22 }
 0x10f   :  { %1553 = vmatpush.bf16.msrb.mxu0 %v2522_v31  ;;  %1566 = vmatpush.bf16.msrb.mxu1 %v2530_v32 }
 0x111   :  { %1578 = vmatpush.bf16.msrb.mxu2 %v2539_v37  ;;  %1591 = vmatpush.bf16.msrb.mxu3 %v2547_v38 }
 0x113   :  { %1554 = vmatpush.bf16.msrb.mxu0 %v2521_v57  ;;  %1567 = vmatpush.bf16.msrb.mxu1 %v2529_v58 }
 0x115   :  { %1579 = vmatpush.bf16.msrb.mxu2 %v2538_v44  ;;  %1592 = vmatpush.bf16.msrb.mxu3 %v2546_v45 }
 0x117   :  { %1555 = vmatpush.bf16.msrb.mxu0 %v2520_v52  ;;  %1568 = vmatpush.bf16.msrb.mxu1 %v2528_v53  ;;  %v2536_v52 = vld [vmem:[#allocation6 + $0x90] sm:$0xff] }
 0x118   :  { %v2544_v53 = vld [vmem:[#allocation6 + $0xd0] sm:$0xff] }
 0x11b   :  { %1556 = vmatpush.bf16.msrb.mxu0 %v2519_v56  ;;  %1569 = vmatpush.bf16.msrb.mxu1 %v2527_v59 }
 0x11f   :  { %1557 = vmatpush.bf16.msrb.mxu0 %v2518_v62  ;;  %1570 = vmatpush.bf16.msrb.mxu1 %v2526_v63 }
 0x13e   :  { %v1035_v50 = vpop.f32.mrf.mxu0  ;;  %v1048_v51 = vpop.f32.mrf.mxu1 }
 0x13f   :  { %v1049_v8 = vadd.f32 %v1048_v51, %v1035_v50  ;;  %v2537_v50 = vld [vmem:[#allocation6 + $0x98] sm:$0xff] }
 0x140   :  { %v2545_v51 = vld [vmem:[#allocation6 + $0xd8] sm:$0xff]  ;;  %1580 = vmatpush.bf16.msrb.mxu2 %v2537_v50 }
 0x141   :  { %1593 = vmatpush.bf16.msrb.mxu3 %v2545_v51 }
 0x144   :  { %1581 = vmatpush.bf16.msrb.mxu2 %v2536_v52 }
 0x145   :  { %1594 = vmatpush.bf16.msrb.mxu3 %v2544_v53 }
 0x146   :  { %v1037_v54 = vpop.f32.mrf.mxu0  ;;  %v1050_v55 = vpop.f32.mrf.mxu1 }
 0x147   :  { %v2535_v54 = vld [vmem:[#allocation6 + $0x88] sm:$0xff] }
 0x148   :  { %v2543_v55 = vld [vmem:[#allocation6 + $0xc8] sm:$0xff]  ;;  %1582 = vmatpush.bf16.msrb.mxu2 %v2535_v54 }
 0x149   :  { %1595 = vmatpush.bf16.msrb.mxu3 %v2543_v55 }
 0x14b   :  { %v1061_v60 = vpop.f32.mrf.mxu2  ;;  %v1074_v61 = vpop.f32.mrf.mxu3 }
 0x14c   :  { %v1062_v11 = vadd.f32 %v1061_v60, %v1049_v8  ;;  %v2534_v60 = vld [vmem:[#allocation6 + $0x80] sm:$0xff] }
 0x14d   :  { %1583 = vmatpush.bf16.msrb.mxu2 %v2534_v60 }
 0x14e   :  { %v1075_v19 = vadd.f32 %v1074_v61, %v1062_v11  ;;  %v2542_v61 = vld [vmem:[#allocation6 + $0xc0] sm:$0xff] }
 0x14f   :  { %v1087_v0 = vpop.f32.mrf.mxu0  ;;  %v1100_v23 = vpop.f32.mrf.mxu1  ;;  %1596 = vmatpush.bf16.msrb.mxu3 %v2542_v61 }
 0x150   :  { %v1101_v12 = vadd.f32 %v1100_v23, %v1087_v0  ;;  %v1240_v0 = vld [vmem:[#allocation1 + $0x12] sm:$0xff]  ;;  %v1241_v23 = vld [vmem:[#allocation1 + $0x1b] sm:$0xff] }
 0x151   :  { %v1248_v4 = vpack.i.b16 %v1240_v0, %v1240_v0 }
 0x153   :  { %v1063_v1 = vpop.f32.mrf.mxu2  ;;  %v1076_v2 = vpop.f32.mrf.mxu3 }
 0x157   :  { %v1089_v5 = vpop.f32.mrf.mxu0  ;;  %v1102_v6 = vpop.f32.mrf.mxu1 }
 0x158   :  { %v1251_v5 = vpack.i.b16 %v1241_v23, %v1241_v23 }
 0x15b   :  { %v1113_v10 = vpop.f32.mrf.mxu2  ;;  %v1126_v13 = vpop.f32.mrf.mxu3 }
 0x15c   :  { %v1114_v14 = vadd.f32 %v1113_v10, %v1101_v12  ;;  %v1250_v12 = vperm.slane %v1248_v4, 0  ;;  %v1253_v10 = vperm.slane %v1251_v5, 0 }
 0x15e   :  { %v1127_v20 = vadd.f32 %v1126_v13, %v1114_v14  ;;  %v1260_v16 = vunpack.c.l.bf16 %v1250_v12  ;;  %v1261_v17 = vunpack.c.l.bf16 %v1253_v10 }
 0x15f   :  { %v1139_v24 = vpop.f32.mrf.mxu0  ;;  %v1152_v25 = vpop.f32.mrf.mxu1 }
 0x160   :  { %v1234_v26 = vpack.c.bf16 %v1127_v20, %v1075_v19  ;;  %v1153_v3 = vadd.f32 %v1152_v25, %v1139_v24 }
 0x162   :  { %v1254_v29 = vunpack.c.l.bf16 %v1234_v26  ;;  %v1255_v30 = vunpack.c.h.bf16 %v1234_v26 }
 0x163   :  { %v1115_v33 = vpop.f32.mrf.mxu2  ;;  %v1128_v34 = vpop.f32.mrf.mxu3 }
 0x164   :  { %v1262_v35 = vadd.f32 %v1258_v27, %v1254_v29  ;;  %v1263_v36 = vadd.f32 %v1259_v28, %v1255_v30 }
 0x166   :  { %v1266_v39 = vpack.c.bf16 %v1263_v36, %v1262_v35 }
 0x167   :  { %v1141_v40 = vpop.f32.mrf.mxu0  ;;  %v1154_v41 = vpop.f32.mrf.mxu1 }
 0x168   :  { %v1268_v42 = vunpack.c.l.bf16 %v1266_v39  ;;  %v1269_v43 = vunpack.c.h.bf16 %v1266_v39  ;;  %v2564_v40 = vld [vmem:[%s2830_s6] ss:$0 sm:$0xff]  ;;  %v1602_v41 = vlaneseq  ;;  %s2657_s6 = smov 107  }
 0x16a   :  { %v1272_v46 = vmul.f32 0.010009766, %v1268_v42  ;;  %v1273_v47 = vmul.f32 0.010009766, %v1269_v43 }
 0x16b   :  { %v1165_v48 = vpop.f32.mrf.mxu2  ;;  %v1178_v49 = vpop.f32.mrf.mxu3 }
 0x16c   :  { %v1282_v31 = vmax.f32 %v1268_v42, %v1272_v46  ;;  %v1283_v32 = vmax.f32 %v1269_v43, %v1273_v47  ;;  %v1166_v6 = vadd.f32 %v1165_v48, %v1153_v3  ;;  %v2787_v43 = vand.u32 127, %v1602_v41 }
 0x16e   :  { %v1286_v57 = vpack.c.bf16 %v1282_v31, %v1282_v31  ;;  %v1287_v58 = vpack.c.bf16 %v1283_v32, %v1283_v32  ;;  %v1179_v13 = vadd.f32 %v1178_v49, %v1166_v6  ;;  %vm1604_vm3 = vcmp.lt.s32.totalorder %v2787_v43, 63 }
 0x16f   :  { %vm1693_vm10 = vcmp.lt.s32.totalorder %v2787_v43, 105  ;;  %vm1692_vm11 = vcmp.lt.s32.totalorder %v2787_v43, 42 }
 0x170   :  { %1558 = vmatmul.bf16.vlgmr.msrb.gmra.mxu0 %v1286_v57  ;;  %1571 = vmatmul.bf16.vlgmr.msrb.gmra.mxu1 %v1287_v58 }
 0x173   :  { %v1167_v56 = vpop.f32.mrf.mxu2  ;;  %v1180_v59 = vpop.f32.mrf.mxu3 }
 0x17f   :  { %v1191_v62 = vpop.f32.mrf.mxu0  ;;  %v1204_v63 = vpop.f32.mrf.mxu1 }
 0x180   :  { %v1205_v8 = vadd.f32 %v1204_v63, %v1191_v62 }
 0x187   :  { %v1193_v1 = vpop.f32.mrf.mxu0  ;;  %v1206_v2 = vpop.f32.mrf.mxu1 }
 0x18b   :  { %v1217_v9 = vpop.f32.mrf.mxu2  ;;  %v1230_v7 = vpop.f32.mrf.mxu3 }
 0x18c   :  { %v1218_v11 = vadd.f32 %v1217_v9, %v1205_v8 }
 0x18e   :  { %v1231_v14 = vadd.f32 %v1230_v7, %v1218_v11 }
 0x190   :  { %v1235_v15 = vpack.c.bf16 %v1231_v14, %v1179_v13 }
 0x192   :  { %v1256_v18 = vunpack.c.l.bf16 %v1235_v15  ;;  %v1257_v19 = vunpack.c.h.bf16 %v1235_v15 }
 0x193   :  { %v1219_v20 = vpop.f32.mrf.mxu2  ;;  %v1232_v21 = vpop.f32.mrf.mxu3 }
 0x194   :  { %v1264_v22 = vadd.f32 %v1260_v16, %v1256_v18  ;;  %v1265_v24 = vadd.f32 %v1261_v17, %v1257_v19 }
 0x196   :  { %v1267_v25 = vpack.c.bf16 %v1265_v24, %v1264_v22 }
 0x198   :  { %v1270_v26 = vunpack.c.l.bf16 %v1267_v25  ;;  %v1271_v27 = vunpack.c.h.bf16 %v1267_v25 }
 0x19a   :  { %v1274_v28 = vmul.f32 0.010009766, %v1270_v26  ;;  %v1275_v29 = vmul.f32 0.010009766, %v1271_v27 }
 0x19c   :  { %v1284_v30 = vmax.f32 %v1270_v26, %v1274_v28  ;;  %v1285_v33 = vmax.f32 %v1271_v27, %v1275_v29 }
 0x19e   :  { %v1288_v34 = vpack.c.bf16 %v1284_v30, %v1284_v30  ;;  %v1289_v35 = vpack.c.bf16 %v1285_v33, %v1285_v33 }
 0x1a0   :  { %1584 = vmatmul.bf16.vlgmr.msrb.gmra.mxu2 %v1288_v34  ;;  %1597 = vmatmul.bf16.vlgmr.msrb.gmra.mxu3 %v1289_v35 }
 0x1ed   :  { %v1559_v36 = vpop.f32.mrf.mxu0  ;;  %v1572_v37 = vpop.f32.mrf.mxu1 }
 0x1ee   :  { %v1560_v42 = vadd.f32 %v2564_v40, %v1559_v36 }
 0x1f0   :  { %v1573_v44 = vadd.f32 %v1572_v37, %v1560_v42 }
 0x1f5   :  { %v1561_v38 = vpop.f32.mrf.mxu0  ;;  %v1574_v39 = vpop.f32.mrf.mxu1 }
 0x223   :  { %v1585_v45 = vpop.f32.mrf.mxu2  ;;  %v1598_v46 = vpop.f32.mrf.mxu3 }
 0x224   :  { %v1586_v47 = vadd.f32 %v1585_v45, %v1573_v44 }
 0x226   :  { %v1599_v48 = vadd.f32 %v1598_v46, %v1586_v47 }
 0x228   :  { %v1605_v49 = vsel %vm1604_vm3, %v1599_v48, 0.0  ;;  %1606 = vrot.lane.b32.xlu2 %v1599_v48, %s2656_s26 }
 0x229   :  { %v1609_v31 = vmul.f32 %v1605_v49, %v1605_v49 }
 0x22b   :  { %v1587_v32 = vpop.f32.mrf.mxu2  ;;  %v1600_v50 = vpop.f32.mrf.mxu3  ;;  %1616 = vrot.lane.b32.xlu1 %v1609_v31, %s2657_s6  ;;  %1610 = vrot.lane.b32.xlu0 %v1609_v31, %s2658_s27 }
 0x233   :  { %1619 = vrot.lane.b32.xlu1 %v1609_v31, %s2659_s28  ;;  %1613 = vrot.lane.b32.xlu0 %v1609_v31, %s2660_s29 }
 0x282   :  { %v1607_v1 = vpop.permute.xlu2 %1606 }
 0x283   :  { %v1608_v4 = vsel %vm1604_vm3, %v1607_v1, 0.0 }
 0x29d   :  { %v1611_v51 = vpop.permute.xlu0 %1610  ;;  %v1617_v57 = vpop.permute.xlu1 %1616 }
 0x29e   :  { %v1612_v58 = vadd.f32 %v1611_v51, %v1609_v31 }
 0x2a5   :  { %v1614_v52 = vpop.permute.xlu0 %1613  ;;  %v1620_v55 = vpop.permute.xlu1 %1619 }
 0x2a6   :  { %v1615_v53 = vadd.f32 %v1614_v52, %v1612_v58 }
 0x2a8   :  { %v1618_v54 = vadd.f32 %v1617_v57, %v1615_v53 }
 0x2aa   :  { %v1621_v56 = vadd.f32 %v1620_v55, %v1618_v54 }
 0x2ac   :  { %v1622_v59 = vmax.f32 %v1621_v56, 1e-24 }
 0x2ae   :  { %2569 = vrsqrt.f32 %v1622_v59  ;;  %vm1629_vm5 = vweird.f32 %v1622_v59 }
 0x2b4   :  { %v2570_v60 = vpop.eup %2569 }
 0x2b5   :  { %v1624_v61 = vmul.f32 %v2570_v60, %v1622_v59  ;;  %vm1630_vm4 = vweird.f32 %v2570_v60 }
 0x2b6   :  { %vm1631_vm6 = vmor %vm1629_vm5, %vm1630_vm4 }
 0x2b7   :  { %v1625_v62 = vmul.f32 %v2570_v60, %v1624_v61 }
 0x2b9   :  { %v1626_v63 = vmul.f32 0.5, %v1625_v62 }
 0x2bb   :  { %v1627_v0 = vsub.f32 1.5, %v1626_v63 }
 0x2bd   :  { %v1628_v23 = vmul.f32 %v2570_v60, %v1627_v0 }
 0x2bf   :  { %v1632_v2 = vsel %vm1631_vm6, %v2570_v60, %v1628_v23 }
 0x2c0   :  { %v2796_v3 = vmul.f32 %v1632_v2, %v1605_v49 }
 0x2c2   :  { %v1634_v5 = vmul.f32 %v2796_v3, %v1608_v4 }
 0x2c4   :  { %1641 = vrot.lane.b32.xlu1 %v1634_v5, %s2657_s6  ;;  %1638 = vrot.lane.b32.xlu0 %v1634_v5, %s2660_s29 }
 0x2c5   :  { %1635 = vrot.lane.b32.xlu2 %v1634_v5, %s2658_s27 }
 0x2cd   :  { %1644 = vrot.lane.b32.xlu2 %v1634_v5, %s2659_s28 }
 0x31f   :  { %v1636_v6 = vpop.permute.xlu2 %1635 }
 0x320   :  { %v1637_v8 = vadd.f32 %v1636_v6, %v1634_v5 }
 0x327   :  { %v1645_v10 = vpop.permute.xlu2 %1644 }
 0x336   :  { %v1639_v9 = vpop.permute.xlu0 %1638  ;;  %v1642_v11 = vpop.permute.xlu1 %1641 }
 0x337   :  { %v1640_v7 = vadd.f32 %v1639_v9, %v1637_v8 }
 0x339   :  { %v1643_v12 = vadd.f32 %v1642_v11, %v1640_v7 }
 0x33b   :  { %v1646_v13 = vadd.f32 %v1645_v10, %v1643_v12 }
 0x33d   :  { %v1647_v14 = vmul.f32 %v1646_v13, %v2796_v3 }
 0x33f   :  { %v1648_v15 = vsub.f32 %v1608_v4, %v1647_v14 }
 0x341   :  { %v1649_v16 = vmul.f32 %v1648_v15, %v1648_v15 }
 0x343   :  { %1656 = vrot.lane.b32.xlu2 %v1649_v16, %s2657_s6  ;;  %1653 = vrot.lane.b32.xlu1 %v1649_v16, %s2660_s29 }
 0x344   :  { %1650 = vrot.lane.b32.xlu0 %v1649_v16, %s2658_s27 }
 0x34b   :  { %1681 = vrot.lane.b32.xlu1 %v2796_v3, %s2661_s30 }
 0x34c   :  { %1659 = vrot.lane.b32.xlu0 %v1649_v16, %s2659_s28 }
 0x354   :  { %1685 = vrot.lane.b32.xlu0 %v2796_v3, %s2662_s8 }
 0x39d   :  { %v1657_v21 = vpop.permute.xlu2 %1656 }
 0x3b5   :  { %v1654_v19 = vpop.permute.xlu1 %1653 }
 0x3b6   :  { %v1651_v17 = vpop.permute.xlu0 %1650 }
 0x3b7   :  { %v1652_v18 = vadd.f32 %v1651_v17, %v1649_v16 }
 0x3b9   :  { %v1655_v20 = vadd.f32 %v1654_v19, %v1652_v18 }
 0x3bb   :  { %v1658_v22 = vadd.f32 %v1657_v21, %v1655_v20 }
 0x3bd   :  { %v1682_v38 = vpop.permute.xlu1 %1681 }
 0x3be   :  { %v1660_v24 = vpop.permute.xlu0 %1659 }
 0x3bf   :  { %v1661_v25 = vadd.f32 %v1660_v24, %v1658_v22 }
 0x3c1   :  { %v1662_v26 = vmax.f32 %v1661_v25, 1e-24 }
 0x3c3   :  { %2571 = vrsqrt.f32 %v1662_v26  ;;  %vm1669_vm8 = vweird.f32 %v1662_v26 }
 0x3c6   :  { %v1686_v39 = vpop.permute.xlu0 %1685 }
 0x3c9   :  { %v2572_v27 = vpop.eup %2571 }
 0x3ca   :  { %v1664_v28 = vmul.f32 %v2572_v27, %v1662_v26  ;;  %vm1670_vm7 = vweird.f32 %v2572_v27 }
 0x3cb   :  { %vm1671_vm9 = vmor %vm1669_vm8, %vm1670_vm7 }
 0x3cc   :  { %v1665_v29 = vmul.f32 %v2572_v27, %v1664_v28 }
 0x3ce   :  { %v1666_v30 = vmul.f32 0.5, %v1665_v29 }
 0x3d0   :  { %v1667_v33 = vsub.f32 1.5, %v1666_v30 }
 0x3d2   :  { %v1668_v34 = vmul.f32 %v2572_v27, %v1667_v33 }
 0x3d4   :  { %v1672_v35 = vsel %vm1671_vm9, %v2572_v27, %v1668_v34 }
 0x3d5   :  { %v1673_v36 = vmul.f32 %v1672_v35, %v1648_v15 }
 0x3d7   :  { %1676 = vrot.lane.b32.xlu0 %v1673_v36, %s2658_s27  ;;  %1687 = vrot.lane.b32.xlu1 %v1673_v36, %s2662_s8 }
 0x3d8   :  { %1683 = vrot.lane.b32.xlu2 %v1673_v36, %s2661_s30 }
 0x3e0   :  { %1674 = vrot.lane.b32.xlu2 %v2796_v3, %s2658_s27 }
 0x432   :  { %v1684_v37 = vpop.permute.xlu2 %1683 }
 0x433   :  { %v1690_v44 = vmul.f32 %v1686_v39, %v1684_v37 }
 0x43a   :  { %v1675_v40 = vpop.permute.xlu2 %1674 }
 0x43b   :  { %v1678_v45 = vmul.f32 %v1675_v40, %v1673_v36 }
 0x449   :  { %v1688_v41 = vpop.permute.xlu1 %1687  ;;  %v1677_v42 = vpop.permute.xlu0 %1676 }
 0x44a   :  { %v1689_v46 = vmul.f32 %v1688_v41, %v1682_v38  ;;  %v1679_v47 = vmul.f32 %v1677_v42, %v2796_v3 }
 0x44c   :  { %v1691_v48 = vsub.f32 %v1689_v46, %v1690_v44  ;;  %v1680_v49 = vsub.f32 %v1678_v45, %v1679_v47 }
 0x44e   :  { %v1694_v31 = vsel %vm1693_vm10, %v1684_v37, %v1691_v48 }
 0x44f   :  { %v1695_v32 = vsel %vm1604_vm3, %v1680_v49, %v1694_v31 }
 0x450   :  { %v1696_v50 = vsel %vm1692_vm11, %v2796_v3, %v1695_v32 }
 0x451   :  { %1697 = vst [vmem:[%s2831_s7] sm:$0xff] %v1696_v50 }
 0x452   :  { %1702 = vsyncpa [#allocation3], 1 }
 0x453   :  { %1703 = vsyncpa [#allocation5], 1 }

</bundles_post_ra>
